<compile_context>
chip_gen: v7x
topology: tpu7x:2x2x1
jax: 0.10.0
libtpu: 0.0.40
codegen_flags: <defaults>
</compile_context>

<pallas_src>
import functools
import math

import jax
import jax.numpy as jnp
from jax import lax
from jax.experimental import pallas as pl
from jax.experimental.pallas import tpu as pltpu


def _round_up(x, m):
    return (x + m - 1) // m * m


def _mha_kernel(*refs, n_heads, head_size, is_causal, kv_block, fused_x):
    """Fused MHA: q/k/v projection -> flash attention -> output projection.

    Grid is (batch, q_tile); the q_tile axis is "arbitrary" so the K/V
    projection (computed once per batch element at qi == 0) stays cached in
    VMEM scratch across all query tiles of that batch element.
    """
    if fused_x:
        (x_ref, wq_ref, wk_ref, wv_ref, wp_ref, bp_ref, o_ref,
         kh_scr, vh_scr) = refs
        xq_ref = xkv_ref = x_ref
    else:
        (xq_ref, xkv_ref, wq_ref, wk_ref, wv_ref, wp_ref, bp_ref, o_ref,
         kh_scr, vh_scr) = refs

    H, D = n_heads, head_size
    HD = H * D
    TQ = xq_ref.shape[1]          # query tile length
    T = xkv_ref.shape[1]          # full sequence length
    KB = kv_block
    n_kv = T // KB
    cdt = wq_ref.dtype            # MXU operand dtype (bf16 by default)

    qi = pl.program_id(1)

    # ---- K/V projection, cached once per batch element in VMEM scratch ----
    @pl.when(qi == 0)
    def _project_kv():
        xkv = xkv_ref[0].astype(cdt)                                        # (T, C)
        k = jnp.dot(xkv, wk_ref[...], preferred_element_type=jnp.float32)   # (T, HD)
        v = jnp.dot(xkv, wv_ref[...], preferred_element_type=jnp.float32)   # (T, HD)
        kh_scr[...] = jnp.transpose(k.astype(cdt).reshape(T, H, D), (1, 0, 2))
        vh_scr[...] = jnp.transpose(v.astype(cdt).reshape(T, H, D), (1, 0, 2))

    # ---- Q projection for this tile (softmax scale folded into Wq) ----
    xq = xq_ref[0].astype(cdt)                                              # (TQ, C)
    q = jnp.dot(xq, wq_ref[...], preferred_element_type=jnp.float32)        # (TQ, HD)
    qh = jnp.transpose(q.astype(cdt).reshape(TQ, H, D), (1, 0, 2))          # (H, TQ, D)

    q_start = qi * TQ
    neg_big = jnp.float32(-1e30)
    if is_causal:
        row_ids = q_start + lax.broadcasted_iota(jnp.int32, (TQ, KB), 0)
        # Skip KV blocks that lie entirely above the causal diagonal.
        n_blocks = (q_start + TQ + KB - 1) // KB
    else:
        n_blocks = n_kv

    # ---- Flash-style online softmax over KV blocks of the cached scratch ----
    def kv_step(j, carry):
        m_prev, l_prev, acc_prev = carry
        off = pl.multiple_of(j * KB, KB)
        k_blk = kh_scr[:, pl.ds(off, KB), :]                                # (H, KB, D)
        v_blk = vh_scr[:, pl.ds(off, KB), :]
        s = jnp.einsum("hqd,hkd->hqk", qh, k_blk,
                       preferred_element_type=jnp.float32)                  # (H, TQ, KB)
        if is_causal:
            col_ids = off + lax.broadcasted_iota(jnp.int32, (TQ, KB), 1)
            s = s + jnp.where(col_ids > row_ids, neg_big,
                              jnp.float32(0.0))[None, :, :]
        m_new = jnp.maximum(m_prev, jnp.max(s, axis=-1, keepdims=True))
        alpha = jnp.exp(m_prev - m_new)
        p = jnp.exp(s - m_new)
        l_new = alpha * l_prev + jnp.sum(p, axis=-1, keepdims=True)
        acc_new = alpha * acc_prev + jnp.einsum(
            "hqk,hkd->hqd", p.astype(cdt), v_blk,
            preferred_element_type=jnp.float32)
        return m_new, l_new, acc_new

    m0 = jnp.full((H, TQ, 1), neg_big, dtype=jnp.float32)
    l0 = jnp.zeros((H, TQ, 1), dtype=jnp.float32)
    a0 = jnp.zeros((H, TQ, D), dtype=jnp.float32)
    _, l_f, acc = lax.fori_loop(0, n_blocks, kv_step, (m0, l0, a0))

    # Normalize with an EUP reciprocal (+ 1 Newton step for full f32 accuracy).
    inv = pl.reciprocal(l_f, approx=True)
    inv = inv * (2.0 - l_f * inv)
    ctx = acc * inv                                                          # (H, TQ, D)

    att = jnp.transpose(ctx, (1, 0, 2)).reshape(TQ, HD)   # head-major == torch layout
    out = jnp.dot(att.astype(cdt), wp_ref[...],
                  preferred_element_type=jnp.float32) + bp_ref[...]          # (TQ, C)
    o_ref[0] = out.astype(o_ref.dtype)


def multihead_attention(x, wq, wk, wv, wp, bp, *, n_heads, head_size,
                        is_causal=False, q_block=None, kv_block=None,
                        compute_dtype=jnp.bfloat16, pad_head_dim=None,
                        single_buffer_weights=True):
    B, T, C = x.shape
    H, D = n_heads, head_size
    HD = H * D
    assert wq.shape == (HD, C) and wk.shape == (HD, C) and wv.shape == (HD, C)
    assert wp.shape == (C, HD) and bp.shape == (C,)

    out_dtype = x.dtype
    cdt = jnp.dtype(compute_dtype) if compute_dtype is not None else x.dtype
    scale = 1.0 / math.sqrt(D)          # true head_size, independent of padding

    # ---- generation-aware VMEM budget (v5e/v6e: 128 MiB, v7x: 64 MiB) ----
    try:
        vmem_cap = int(pltpu.get_tpu_info().vmem_capacity_bytes)
    except Exception:
        vmem_cap = 64 * 1024 * 1024
    vmem_limit = int(vmem_cap * 3 // 4)   # headroom for Mosaic internal scratch

    # ---- lane-density padding: C always to 128; head dim only when >= 64 ----
    LANE = 128
    C_p = _round_up(C, LANE)
    if pad_head_dim is None:
        pad_head_dim = (D % LANE != 0) and (D >= 64)
    D_p = _round_up(D, LANE) if pad_head_dim else D
    HD_p = H * D_p

    # ---- block selection ----
    auto_q = q_block is None
    auto_kv = kv_block is None
    if auto_kv:
        kv_block = T
        if T > 512:
            for cand in (512, 256, 128):
                if T % cand == 0:
                    kv_block = cand
                    break
    if auto_q:
        big = 1024 if vmem_cap > (96 << 20) else 512
        q_block = T
        if T > big:
            for cand in (big, 512, 256, 128):
                if T % cand == 0:
                    q_block = cand
                    break

    def _score_bytes(qb, kb):           # live f32 copies of the per-block scores
        return 3 * H * qb * kb * 4

    def _halve_ok(v):
        h = v // 2
        return h >= 128 and h % 8 == 0 and T % h == 0

    while (auto_kv and _score_bytes(q_block, kv_block) > vmem_limit // 4
           and _halve_ok(kv_block)):
        kv_block //= 2
    while (auto_q and _score_bytes(q_block, kv_block) > vmem_limit // 4
           and _halve_ok(q_block)):
        q_block //= 2

    assert T % kv_block == 0
    assert T % q_block == 0 and (q_block == T or q_block % 8 == 0)
    n_qt = T // q_block
    fused_x = (n_qt == 1)
    # TODO(synk): for B == 1 on v7x (2 TensorCores) add a head-group parallel grid
    # axis (disjoint K/V per group, partial output projection summed outside);
    # with K/V cached in scratch the qi axis must stay "arbitrary".
    # TODO(synk): for very long sequences where the (H, T, D) K/V cache exceeds
    # VMEM, spill it to an HBM scratch and double-buffer per-KV-block DMA.

    # ---- one-time wrapper-side prep (XLA): pad, transpose, fold scale ----
    def _pad_to(a, axis, new):
        if a.shape[axis] == new:
            return a
        widths = [(0, 0)] * a.ndim
        widths[axis] = (0, new - a.shape[axis])
        return jnp.pad(a, widths)

    def _pad_head_rows(w):              # (H*D, X) -> (H*D_p, X), zero-pad per head
        if D_p == D:
            return w
        X = w.shape[1]
        return _pad_to(w.reshape(H, D, X), 1, D_p).reshape(H * D_p, X)

    wq_t = _pad_to(_pad_head_rows(wq.astype(jnp.float32) * scale), 1, C_p).astype(cdt).T
    wk_t = _pad_to(_pad_head_rows(wk.astype(jnp.float32)), 1, C_p).astype(cdt).T
    wv_t = _pad_to(_pad_head_rows(wv.astype(jnp.float32)), 1, C_p).astype(cdt).T
    wp_t = _pad_to(_pad_head_rows(wp.astype(jnp.float32).T), 1, C_p).astype(cdt)  # (HD_p, C_p)
    bp2 = _pad_to(bp.astype(jnp.float32), 0, C_p).reshape(1, C_p)
    x_in = _pad_to(x, 2, C_p).astype(cdt)

    kernel = functools.partial(_mha_kernel, n_heads=H, head_size=D_p,
                               is_causal=is_causal, kv_block=kv_block,
                               fused_x=fused_x)
    scratch = [pltpu.VMEM((H, T, D_p), cdt),     # cached K heads
               pltpu.VMEM((H, T, D_p), cdt)]     # cached V heads

    def _build_and_run(single_buf):
        # Weights/bias have constant block indices; a single pipeline buffer
        # avoids double-buffering their VMEM.  Fallback path uses defaults.
        wmode = {"pipeline_mode": pl.Buffered(1)} if single_buf else {}
        if fused_x:
            x_specs = [pl.BlockSpec((1, T, C_p), lambda b, qi: (b, 0, 0))]
            x_args = (x_in,)
        else:
            x_specs = [pl.BlockSpec((1, q_block, C_p), lambda b, qi: (b, qi, 0)),
                       pl.BlockSpec((1, T, C_p), lambda b, qi: (b, 0, 0))]
            x_args = (x_in, x_in)
        in_specs = x_specs + [
            pl.BlockSpec((C_p, HD_p), lambda b, qi: (0, 0), **wmode),   # Wq.T (scaled)
            pl.BlockSpec((C_p, HD_p), lambda b, qi: (0, 0), **wmode),   # Wk.T
            pl.BlockSpec((C_p, HD_p), lambda b, qi: (0, 0), **wmode),   # Wv.T
            pl.BlockSpec((HD_p, C_p), lambda b, qi: (0, 0), **wmode),   # Wproj.T
            pl.BlockSpec((1, C_p), lambda b, qi: (0, 0), **wmode),      # bproj
        ]
        args = x_args + (wq_t, wk_t, wv_t, wp_t, bp2)
        return pl.pallas_call(
            kernel,
            out_shape=jax.ShapeDtypeStruct((B, T, C_p), out_dtype),
            grid_spec=pltpu.PrefetchScalarGridSpec(
                num_scalar_prefetch=0,
                grid=(B, n_qt),
                in_specs=in_specs,
                out_specs=pl.BlockSpec((1, q_block, C_p), lambda b, qi: (b, qi, 0)),
                scratch_shapes=scratch,
            ),
            compiler_params=pltpu.CompilerParams(
                dimension_semantics=("parallel", "arbitrary"),
                vmem_limit_bytes=vmem_limit,
            ),
        )(*args)

    if single_buffer_weights:
        try:
            out = _build_and_run(True)
        except Exception:
            out = _build_and_run(False)
    else:
        out = _build_and_run(False)

    return out[..., :C] if C_p != C else out


def _reference(x, wq, wk, wv, wp, bp, *, n_heads, head_size, is_causal=False):
    B, T, C = x.shape
    q = (x @ wq.T).reshape(B, T, n_heads, head_size).transpose(0, 2, 1, 3)
    k = (x @ wk.T).reshape(B, T, n_heads, head_size).transpose(0, 2, 1, 3)
    v = (x @ wv.T).reshape(B, T, n_heads, head_size).transpose(0, 2, 1, 3)
    s = q @ k.transpose(0, 1, 3, 2) / math.sqrt(head_size)
    if is_causal:
        mask = jnp.triu(jnp.ones((T, T), bool), k=1)
        s = jnp.where(mask, -jnp.inf, s)
    p = jax.nn.softmax(s, axis=-1)
    out = (p @ v).transpose(0, 2, 1, 3).reshape(B, T, n_heads * head_size)
    return out @ wp.T + bp


if __name__ == "__main__":
    base_key = jax.random.PRNGKey(0)

    def run_case(case_idx, *, B, T, n_embd, n_heads, head_size, is_causal,
                 tol, **kwargs):
        HD = n_heads * head_size
        key = jax.random.fold_in(base_key, case_idx)
        kx, kq, kk, kv, kp, kb = jax.random.split(key, 6)

        x = jax.random.normal(kx, (B, T, n_embd), dtype=jnp.float32)
        bound_in = 1.0 / math.sqrt(n_embd)
        bound_hd = 1.0 / math.sqrt(HD)
        wq = jax.random.uniform(kq, (HD, n_embd), jnp.float32, -bound_in, bound_in)
        wk = jax.random.uniform(kk, (HD, n_embd), jnp.float32, -bound_in, bound_in)
        wv = jax.random.uniform(kv, (HD, n_embd), jnp.float32, -bound_in, bound_in)
        wp = jax.random.uniform(kp, (n_embd, HD), jnp.float32, -bound_hd, bound_hd)
        bp = jax.random.uniform(kb, (n_embd,), jnp.float32, -bound_hd, bound_hd)

        out = multihead_attention(x, wq, wk, wv, wp, bp,
                                  n_heads=n_heads, head_size=head_size,
                                  is_causal=is_causal, **kwargs)
        out = jax.block_until_ready(out)
        ref = _reference(x, wq, wk, wv, wp, bp, n_heads=n_heads,
                         head_size=head_size, is_causal=is_causal)
        assert out.shape == (B, T, n_embd)
        err = float(jnp.max(jnp.abs(out - ref)))
        assert jnp.allclose(out, ref, atol=tol, rtol=tol), (case_idx, err)

    # f32 compute path, fused single-tile grid, C padded 32 -> 128.
    run_case(0, B=2, T=8, n_embd=32, n_heads=4, head_size=8, is_causal=False,
             tol=1e-2, compute_dtype=jnp.float32)
    # Default bf16 path; multi-q-tile grid with K/V cached in VMEM scratch, and
    # the causal flash loop skipping above-diagonal KV blocks.
    run_case(1, B=2, T=256, n_embd=32, n_heads=4, head_size=8, is_causal=True,
             tol=5e-2, q_block=64, kv_block=64)
    # Head-dim padding path (D 8 -> 128) for lane-dense per-head layout.
    run_case(2, B=1, T=128, n_embd=48, n_heads=2, head_size=8, is_causal=False,
             tol=5e-2, pad_head_dim=True)

    print("KERNEL_OK")
</pallas_src>

<mosaic_0001>
module attributes {stable_mosaic.version = 11 : i64} {
  func.func @_mha_kernel(%arg0: i32, %arg1: i32, %arg2: memref<1x8x128xf32, #tpu.memory_space<vmem>>, %arg3: memref<128x32xf32, #tpu.memory_space<vmem>>, %arg4: memref<128x32xf32, #tpu.memory_space<vmem>>, %arg5: memref<128x32xf32, #tpu.memory_space<vmem>>, %arg6: memref<32x128xf32, #tpu.memory_space<vmem>>, %arg7: memref<1x128xf32, #tpu.memory_space<vmem>>, %arg8: memref<1x8x128xf32, #tpu.memory_space<vmem>>, %arg9: memref<4x8x8xf32, #tpu.memory_space<vmem>>, %arg10: memref<4x8x8xf32, #tpu.memory_space<vmem>>) attributes {dimension_semantics = [#tpu.dimension_semantics<parallel>, #tpu.dimension_semantics<arbitrary>], iteration_bounds = array<i64: 2, 1>, scalar_prefetch = 0 : i64, scratch_operands = 2 : i64, tpu.core_type = #tpu.core_type<tc>, window_params = [{transform_indices = @transform_0, window_bounds = array<i64: 1, 8, 128>}, {pipeline_mode = #tpu.pipeline_mode<synchronous>, transform_indices = @transform_1, window_bounds = array<i64: 128, 32>}, {pipeline_mode = #tpu.pipeline_mode<synchronous>, transform_indices = @transform_2, window_bounds = array<i64: 128, 32>}, {pipeline_mode = #tpu.pipeline_mode<synchronous>, transform_indices = @transform_3, window_bounds = array<i64: 128, 32>}, {pipeline_mode = #tpu.pipeline_mode<synchronous>, transform_indices = @transform_4, window_bounds = array<i64: 32, 128>}, {pipeline_mode = #tpu.pipeline_mode<synchronous>, transform_indices = @transform_5, window_bounds = array<i64: 1, 128>}, {transform_indices = @transform_6, window_bounds = array<i64: 1, 8, 128>}]} {
    %c0_i32 = arith.constant 0 : i32
    %0 = arith.cmpi eq, %arg1, %c0_i32 : i32
    %1 = arith.extui %0 : i1 to i32
    %c0_i32_0 = arith.constant 0 : i32
    %2 = arith.cmpi ne, %1, %c0_i32_0 : i32
    scf.if %2 {
      %c0_26 = arith.constant 0 : index
      %c0_27 = arith.constant 0 : index
      %c0_28 = arith.constant 0 : index
      %52 = vector.load %arg2[%c0_26, %c0_27, %c0_28] : memref<1x8x128xf32, #tpu.memory_space<vmem>>, vector<1x8x128xf32>
      %53 = vector.shape_cast %52 : vector<1x8x128xf32> to vector<8x128xf32>
      %c0_29 = arith.constant 0 : index
      %c0_30 = arith.constant 0 : index
      %54 = vector.load %arg4[%c0_29, %c0_30] : memref<128x32xf32, #tpu.memory_space<vmem>>, vector<128x32xf32>
      %cst_31 = arith.constant dense<0.000000e+00> : vector<8x32xf32>
      %55 = tpu.matmul %53, %54, %cst_31 {dimension_numbers = #tpu.dot_dimension_numbers<[1], [0], [0], [1], [0, 0, 1, 1], [], []>} : vector<8x128xf32>, vector<128x32xf32>, vector<8x32xf32> -> vector<8x32xf32>
      %c0_32 = arith.constant 0 : index
      %c0_33 = arith.constant 0 : index
      %56 = vector.load %arg5[%c0_32, %c0_33] : memref<128x32xf32, #tpu.memory_space<vmem>>, vector<128x32xf32>
      %cst_34 = arith.constant dense<0.000000e+00> : vector<8x32xf32>
      %57 = tpu.matmul %53, %56, %cst_34 {dimension_numbers = #tpu.dot_dimension_numbers<[1], [0], [0], [1], [0, 0, 1, 1], [], []>} : vector<8x128xf32>, vector<128x32xf32>, vector<8x32xf32> -> vector<8x32xf32>
      %58 = vector.shape_cast %55 : vector<8x32xf32> to vector<8x4x8xf32>
      %59 = tpu.transpose %58, [1, 0, 2] : vector<8x4x8xf32> -> vector<4x8x8xf32>
      %c0_35 = arith.constant 0 : index
      %c0_36 = arith.constant 0 : index
      %c0_37 = arith.constant 0 : index
      %60 = vector.load %arg9[%c0_35, %c0_36, %c0_37] : memref<4x8x8xf32, #tpu.memory_space<vmem>>, vector<4x8x8xf32>
      tpu.vector_store %arg9[%c0_35, %c0_36, %c0_37], %59 {strides = array<i32>} : memref<4x8x8xf32, #tpu.memory_space<vmem>>, vector<4x8x8xf32>,
      %61 = vector.shape_cast %57 : vector<8x32xf32> to vector<8x4x8xf32>
      %62 = tpu.transpose %61, [1, 0, 2] : vector<8x4x8xf32> -> vector<4x8x8xf32>
      %c0_38 = arith.constant 0 : index
      %c0_39 = arith.constant 0 : index
      %c0_40 = arith.constant 0 : index
      %63 = vector.load %arg10[%c0_38, %c0_39, %c0_40] : memref<4x8x8xf32, #tpu.memory_space<vmem>>, vector<4x8x8xf32>
      tpu.vector_store %arg10[%c0_38, %c0_39, %c0_40], %62 {strides = array<i32>} : memref<4x8x8xf32, #tpu.memory_space<vmem>>, vector<4x8x8xf32>,
    } else {
    }
    %c0 = arith.constant 0 : index
    %c0_1 = arith.constant 0 : index
    %c0_2 = arith.constant 0 : index
    %3 = vector.load %arg2[%c0, %c0_1, %c0_2] : memref<1x8x128xf32, #tpu.memory_space<vmem>>, vector<1x8x128xf32>
    %4 = vector.shape_cast %3 : vector<1x8x128xf32> to vector<8x128xf32>
    %c0_3 = arith.constant 0 : index
    %c0_4 = arith.constant 0 : index
    %5 = vector.load %arg3[%c0_3, %c0_4] : memref<128x32xf32, #tpu.memory_space<vmem>>, vector<128x32xf32>
    %cst = arith.constant dense<0.000000e+00> : vector<8x32xf32>
    %6 = tpu.matmul %4, %5, %cst {dimension_numbers = #tpu.dot_dimension_numbers<[1], [0], [0], [1], [0, 0, 1, 1], [], []>} : vector<8x128xf32>, vector<128x32xf32>, vector<8x32xf32> -> vector<8x32xf32>
    %7 = vector.shape_cast %6 : vector<8x32xf32> to vector<8x4x8xf32>
    %8 = tpu.transpose %7, [1, 0, 2] : vector<8x4x8xf32> -> vector<4x8x8xf32>
    %cst_5 = arith.constant -1.000000e+30 : f32
    %9 = vector.broadcast %cst_5 : f32 to vector<4x8x1xf32>
    %cst_6 = arith.constant 0.000000e+00 : f32
    %10 = vector.broadcast %cst_6 : f32 to vector<4x8x1xf32>
    %cst_7 = arith.constant 0.000000e+00 : f32
    %11 = vector.broadcast %cst_7 : f32 to vector<4x8x8xf32>
    %c0_i32_8 = arith.constant 0 : i32
    %c8_i32 = arith.constant 8 : i32
    %12 = arith.muli %c0_i32_8, %c8_i32 : i32
    %13 = tpu.assume_multiple %12, 8 : i32
    %c0_9 = arith.constant 0 : index
    %14 = arith.index_cast %13 : i32 to index
    %c0_10 = arith.constant 0 : index
    %15 = vector.load %arg9[%c0_9, %14, %c0_10] : memref<4x8x8xf32, #tpu.memory_space<vmem>>, vector<4x8x8xf32>
    %c0_11 = arith.constant 0 : index
    %16 = arith.index_cast %13 : i32 to index
    %c0_12 = arith.constant 0 : index
    %17 = vector.load %arg10[%c0_11, %16, %c0_12] : memref<4x8x8xf32, #tpu.memory_space<vmem>>, vector<4x8x8xf32>
    "tpu.trace_start"() <{level = 10 : i32, message = "hqd,hkd->hqk"}> : () -> ()
    %cst_13 = arith.constant dense<0.000000e+00> : vector<4x8x8xf32>
    %18 = tpu.matmul %8, %15, %cst_13 {dimension_numbers = #tpu.dot_dimension_numbers<[2], [2], [1], [1], [0, 0, 0, 1, 1, 1], [0], [0]>} : vector<4x8x8xf32>, vector<4x8x8xf32>, vector<4x8x8xf32> -> vector<4x8x8xf32>
    "tpu.trace_stop"() : () -> ()
    %cst_14 = arith.constant dense<0xFF800000> : vector<4x8xf32>
    %19 = vector.multi_reduction <maximumf>, %18, %cst_14 [2] : vector<4x8x8xf32> to vector<4x8xf32>
    %20 = vector.shape_cast %19 : vector<4x8xf32> to vector<4x8x1xf32>
    %21 = arith.maximumf %9, %20 : vector<4x8x1xf32>
    %22 = arith.subf %9, %21 : vector<4x8x1xf32>
    %23 = math.exp %22 : vector<4x8x1xf32>
    %24 = vector.broadcast %21 : vector<4x8x1xf32> to vector<4x8x8xf32>
    %25 = arith.subf %18, %24 : vector<4x8x8xf32>
    %26 = math.exp %25 : vector<4x8x8xf32>
    %27 = arith.mulf %23, %10 : vector<4x8x1xf32>
    %cst_15 = arith.constant dense<0.000000e+00> : vector<4x8xf32>
    %28 = vector.multi_reduction <add>, %26, %cst_15 [2] : vector<4x8x8xf32> to vector<4x8xf32>
    %29 = vector.shape_cast %28 : vector<4x8xf32> to vector<4x8x1xf32>
    %30 = arith.addf %27, %29 : vector<4x8x1xf32>
    %31 = vector.broadcast %23 : vector<4x8x1xf32> to vector<4x8x8xf32>
    %32 = arith.mulf %31, %11 : vector<4x8x8xf32>
    "tpu.trace_start"() <{level = 10 : i32, message = "hqk,hkd->hqd"}> : () -> ()
    %cst_16 = arith.constant dense<0.000000e+00> : vector<4x8x8xf32>
    %33 = tpu.matmul %26, %17, %cst_16 {dimension_numbers = #tpu.dot_dimension_numbers<[2], [1], [1], [2], [0, 0, 0, 1, 1, 2], [0], [0]>} : vector<4x8x8xf32>, vector<4x8x8xf32>, vector<4x8x8xf32> -> vector<4x8x8xf32>
    "tpu.trace_stop"() : () -> ()
    %34 = arith.addf %32, %33 : vector<4x8x8xf32>
    %c1_i32 = arith.constant 1 : i32
    %35 = tpu.reciprocal %30 {approx = true} : vector<4x8x1xf32> -> vector<4x8x1xf32>
    %36 = arith.mulf %30, %35 : vector<4x8x1xf32>
    %cst_17 = arith.constant 2.000000e+00 : f32
    %37 = vector.broadcast %cst_17 : f32 to vector<4x8x1xf32>
    %38 = arith.subf %37, %36 : vector<4x8x1xf32>
    %39 = arith.mulf %35, %38 : vector<4x8x1xf32>
    %40 = vector.broadcast %39 : vector<4x8x1xf32> to vector<4x8x8xf32>
    %41 = arith.mulf %34, %40 : vector<4x8x8xf32>
    %42 = tpu.transpose %41, [1, 0, 2] : vector<4x8x8xf32> -> vector<8x4x8xf32>
    %43 = vector.shape_cast %42 : vector<8x4x8xf32> to vector<8x32xf32>
    %c0_18 = arith.constant 0 : index
    %c0_19 = arith.constant 0 : index
    %44 = vector.load %arg6[%c0_18, %c0_19] : memref<32x128xf32, #tpu.memory_space<vmem>>, vector<32x128xf32>
    %cst_20 = arith.constant dense<0.000000e+00> : vector<8x128xf32>
    %45 = tpu.matmul %43, %44, %cst_20 {dimension_numbers = #tpu.dot_dimension_numbers<[1], [0], [0], [1], [0, 0, 1, 1], [], []>} : vector<8x32xf32>, vector<32x128xf32>, vector<8x128xf32> -> vector<8x128xf32>
    %c0_21 = arith.constant 0 : index
    %c0_22 = arith.constant 0 : index
    %46 = vector.load %arg7[%c0_21, %c0_22] : memref<1x128xf32, #tpu.memory_space<vmem>>, vector<1x128xf32>
    %47 = vector.broadcast %46 : vector<1x128xf32> to vector<8x128xf32>
    %48 = arith.addf %45, %47 : vector<8x128xf32>
    %c0_23 = arith.constant 0 : index
    %c0_24 = arith.constant 0 : index
    %c0_25 = arith.constant 0 : index
    %49 = vector.load %arg8[%c0_23, %c0_24, %c0_25] : memref<1x8x128xf32, #tpu.memory_space<vmem>>, vector<1x8x128xf32>
    %50 = vector.shape_cast %49 : vector<1x8x128xf32> to vector<8x128xf32>
    %51 = vector.shape_cast %48 : vector<8x128xf32> to vector<1x8x128xf32>
    tpu.vector_store %arg8[%c0_23, %c0_24, %c0_25], %51 {strides = array<i32>} : memref<1x8x128xf32, #tpu.memory_space<vmem>>, vector<1x8x128xf32>,
    return
  }
  func.func @transform_0(%arg0: i32, %arg1: i32) -> (i32, i32, i32) {
    %c0_i32 = arith.constant 0 : i32
    %c0_i32_0 = arith.constant 0 : i32
    %c0_i32_1 = arith.constant 0 : i32
    return %arg0, %c0_i32, %c0_i32_0 : i32, i32, i32
  }
  func.func @transform_1(%arg0: i32, %arg1: i32) -> (i32, i32) {
    %c0_i32 = arith.constant 0 : i32
    %c0_i32_0 = arith.constant 0 : i32
    %c0_i32_1 = arith.constant 0 : i32
    return %c0_i32, %c0_i32_0 : i32, i32
  }
  func.func @transform_2(%arg0: i32, %arg1: i32) -> (i32, i32) {
    %c0_i32 = arith.constant 0 : i32
    %c0_i32_0 = arith.constant 0 : i32
    %c0_i32_1 = arith.constant 0 : i32
    return %c0_i32, %c0_i32_0 : i32, i32
  }
  func.func @transform_3(%arg0: i32, %arg1: i32) -> (i32, i32) {
    %c0_i32 = arith.constant 0 : i32
    %c0_i32_0 = arith.constant 0 : i32
    %c0_i32_1 = arith.constant 0 : i32
    return %c0_i32, %c0_i32_0 : i32, i32
  }
  func.func @transform_4(%arg0: i32, %arg1: i32) -> (i32, i32) {
    %c0_i32 = arith.constant 0 : i32
    %c0_i32_0 = arith.constant 0 : i32
    %c0_i32_1 = arith.constant 0 : i32
    return %c0_i32, %c0_i32_0 : i32, i32
  }
  func.func @transform_5(%arg0: i32, %arg1: i32) -> (i32, i32) {
    %c0_i32 = arith.constant 0 : i32
    %c0_i32_0 = arith.constant 0 : i32
    %c0_i32_1 = arith.constant 0 : i32
    return %c0_i32, %c0_i32_0 : i32, i32
  }
  func.func @transform_6(%arg0: i32, %arg1: i32) -> (i32, i32, i32) {
    %c0_i32 = arith.constant 0 : i32
    %c0_i32_0 = arith.constant 0 : i32
    return %arg0, %arg1, %c0_i32 : i32, i32, i32
  }
}

module attributes {stable_mosaic.version = 11 : i64} {
  func.func @_mha_kernel(%arg0: i32, %arg1: i32, %arg2: memref<1x8x128xf32, #tpu.memory_space<vmem>>, %arg3: memref<128x32xf32, #tpu.memory_space<vmem>>, %arg4: memref<128x32xf32, #tpu.memory_space<vmem>>, %arg5: memref<128x32xf32, #tpu.memory_space<vmem>>, %arg6: memref<32x128xf32, #tpu.memory_space<vmem>>, %arg7: memref<1x128xf32, #tpu.memory_space<vmem>>, %arg8: memref<1x8x128xf32, #tpu.memory_space<vmem>>, %arg9: memref<4x8x8xf32, #tpu.memory_space<vmem>>, %arg10: memref<4x8x8xf32, #tpu.memory_space<vmem>>) attributes {dimension_semantics = [#tpu.dimension_semantics<parallel>, #tpu.dimension_semantics<arbitrary>], iteration_bounds = array<i64: 2, 1>, scalar_prefetch = 0 : i64, scratch_operands = 2 : i64, tpu.core_type = #tpu.core_type<tc>, window_params = [{transform_indices = @transform_0, window_bounds = array<i64: 1, 8, 128>}, {pipeline_mode = #tpu.pipeline_mode<synchronous>, transform_indices = @transform_1, window_bounds = array<i64: 128, 32>}, {pipeline_mode = #tpu.pipeline_mode<synchronous>, transform_indices = @transform_2, window_bounds = array<i64: 128, 32>}, {pipeline_mode = #tpu.pipeline_mode<synchronous>, transform_indices = @transform_3, window_bounds = array<i64: 128, 32>}, {pipeline_mode = #tpu.pipeline_mode<synchronous>, transform_indices = @transform_4, window_bounds = array<i64: 32, 128>}, {pipeline_mode = #tpu.pipeline_mode<synchronous>, transform_indices = @transform_5, window_bounds = array<i64: 1, 128>}, {transform_indices = @transform_6, window_bounds = array<i64: 1, 8, 128>}]} {
    %c0_i32 = arith.constant 0 : i32
    %0 = arith.cmpi eq, %arg1, %c0_i32 : i32
    %1 = arith.extui %0 : i1 to i32
    %c0_i32_0 = arith.constant 0 : i32
    %2 = arith.cmpi ne, %1, %c0_i32_0 : i32
    scf.if %2 {
      %c0_26 = arith.constant 0 : index
      %c0_27 = arith.constant 0 : index
      %c0_28 = arith.constant 0 : index
      %52 = vector.load %arg2[%c0_26, %c0_27, %c0_28] : memref<1x8x128xf32, #tpu.memory_space<vmem>>, vector<1x8x128xf32>
      %53 = vector.shape_cast %52 : vector<1x8x128xf32> to vector<8x128xf32>
      %c0_29 = arith.constant 0 : index
      %c0_30 = arith.constant 0 : index
      %54 = vector.load %arg4[%c0_29, %c0_30] : memref<128x32xf32, #tpu.memory_space<vmem>>, vector<128x32xf32>
      %cst_31 = arith.constant dense<0.000000e+00> : vector<8x32xf32>
      %55 = tpu.matmul %53, %54, %cst_31 {dimension_numbers = #tpu.dot_dimension_numbers<[1], [0], [0], [1], [0, 0, 1, 1], [], []>} : vector<8x128xf32>, vector<128x32xf32>, vector<8x32xf32> -> vector<8x32xf32>
      %c0_32 = arith.constant 0 : index
      %c0_33 = arith.constant 0 : index
      %56 = vector.load %arg5[%c0_32, %c0_33] : memref<128x32xf32, #tpu.memory_space<vmem>>, vector<128x32xf32>
      %cst_34 = arith.constant dense<0.000000e+00> : vector<8x32xf32>
      %57 = tpu.matmul %53, %56, %cst_34 {dimension_numbers = #tpu.dot_dimension_numbers<[1], [0], [0], [1], [0, 0, 1, 1], [], []>} : vector<8x128xf32>, vector<128x32xf32>, vector<8x32xf32> -> vector<8x32xf32>
      %58 = vector.shape_cast %55 : vector<8x32xf32> to vector<8x4x8xf32>
      %59 = tpu.transpose %58, [1, 0, 2] : vector<8x4x8xf32> -> vector<4x8x8xf32>
      %c0_35 = arith.constant 0 : index
      %c0_36 = arith.constant 0 : index
      %c0_37 = arith.constant 0 : index
      %60 = vector.load %arg9[%c0_35, %c0_36, %c0_37] : memref<4x8x8xf32, #tpu.memory_space<vmem>>, vector<4x8x8xf32>
      tpu.vector_store %arg9[%c0_35, %c0_36, %c0_37], %59 {strides = array<i32>} : memref<4x8x8xf32, #tpu.memory_space<vmem>>, vector<4x8x8xf32>,
      %61 = vector.shape_cast %57 : vector<8x32xf32> to vector<8x4x8xf32>
      %62 = tpu.transpose %61, [1, 0, 2] : vector<8x4x8xf32> -> vector<4x8x8xf32>
      %c0_38 = arith.constant 0 : index
      %c0_39 = arith.constant 0 : index
      %c0_40 = arith.constant 0 : index
      %63 = vector.load %arg10[%c0_38, %c0_39, %c0_40] : memref<4x8x8xf32, #tpu.memory_space<vmem>>, vector<4x8x8xf32>
      tpu.vector_store %arg10[%c0_38, %c0_39, %c0_40], %62 {strides = array<i32>} : memref<4x8x8xf32, #tpu.memory_space<vmem>>, vector<4x8x8xf32>,
    } else {
    }
    %c0 = arith.constant 0 : index
    %c0_1 = arith.constant 0 : index
    %c0_2 = arith.constant 0 : index
    %3 = vector.load %arg2[%c0, %c0_1, %c0_2] : memref<1x8x128xf32, #tpu.memory_space<vmem>>, vector<1x8x128xf32>
    %4 = vector.shape_cast %3 : vector<1x8x128xf32> to vector<8x128xf32>
    %c0_3 = arith.constant 0 : index
    %c0_4 = arith.constant 0 : index
    %5 = vector.load %arg3[%c0_3, %c0_4] : memref<128x32xf32, #tpu.memory_space<vmem>>, vector<128x32xf32>
    %cst = arith.constant dense<0.000000e+00> : vector<8x32xf32>
    %6 = tpu.matmul %4, %5, %cst {dimension_numbers = #tpu.dot_dimension_numbers<[1], [0], [0], [1], [0, 0, 1, 1], [], []>} : vector<8x128xf32>, vector<128x32xf32>, vector<8x32xf32> -> vector<8x32xf32>
    %7 = vector.shape_cast %6 : vector<8x32xf32> to vector<8x4x8xf32>
    %8 = tpu.transpose %7, [1, 0, 2] : vector<8x4x8xf32> -> vector<4x8x8xf32>
    %cst_5 = arith.constant -1.000000e+30 : f32
    %9 = vector.broadcast %cst_5 : f32 to vector<4x8x1xf32>
    %cst_6 = arith.constant 0.000000e+00 : f32
    %10 = vector.broadcast %cst_6 : f32 to vector<4x8x1xf32>
    %cst_7 = arith.constant 0.000000e+00 : f32
    %11 = vector.broadcast %cst_7 : f32 to vector<4x8x8xf32>
    %c0_i32_8 = arith.constant 0 : i32
    %c8_i32 = arith.constant 8 : i32
    %12 = arith.muli %c0_i32_8, %c8_i32 : i32
    %13 = tpu.assume_multiple %12, 8 : i32
    %c0_9 = arith.constant 0 : index
    %14 = arith.index_cast %13 : i32 to index
    %c0_10 = arith.constant 0 : index
    %15 = vector.load %arg9[%c0_9, %14, %c0_10] : memref<4x8x8xf32, #tpu.memory_space<vmem>>, vector<4x8x8xf32>
    %c0_11 = arith.constant 0 : index
    %16 = arith.index_cast %13 : i32 to index
    %c0_12 = arith.constant 0 : index
    %17 = vector.load %arg10[%c0_11, %16, %c0_12] : memref<4x8x8xf32, #tpu.memory_space<vmem>>, vector<4x8x8xf32>
    "tpu.trace_start"() <{level = 10 : i32, message = "hqd,hkd->hqk"}> : () -> ()
    %cst_13 = arith.constant dense<0.000000e+00> : vector<4x8x8xf32>
    %18 = tpu.matmul %8, %15, %cst_13 {dimension_numbers = #tpu.dot_dimension_numbers<[2], [2], [1], [1], [0, 0, 0, 1, 1, 1], [0], [0]>} : vector<4x8x8xf32>, vector<4x8x8xf32>, vector<4x8x8xf32> -> vector<4x8x8xf32>
    "tpu.trace_stop"() : () -> ()
    %cst_14 = arith.constant dense<0xFF800000> : vector<4x8xf32>
    %19 = vector.multi_reduction <maximumf>, %18, %cst_14 [2] : vector<4x8x8xf32> to vector<4x8xf32>
    %20 = vector.shape_cast %19 : vector<4x8xf32> to vector<4x8x1xf32>
    %21 = arith.maximumf %9, %20 : vector<4x8x1xf32>
    %22 = arith.subf %9, %21 : vector<4x8x1xf32>
    %23 = math.exp %22 : vector<4x8x1xf32>
    %24 = vector.broadcast %21 : vector<4x8x1xf32> to vector<4x8x8xf32>
    %25 = arith.subf %18, %24 : vector<4x8x8xf32>
    %26 = math.exp %25 : vector<4x8x8xf32>
    %27 = arith.mulf %23, %10 : vector<4x8x1xf32>
    %cst_15 = arith.constant dense<0.000000e+00> : vector<4x8xf32>
    %28 = vector.multi_reduction <add>, %26, %cst_15 [2] : vector<4x8x8xf32> to vector<4x8xf32>
    %29 = vector.shape_cast %28 : vector<4x8xf32> to vector<4x8x1xf32>
    %30 = arith.addf %27, %29 : vector<4x8x1xf32>
    %31 = vector.broadcast %23 : vector<4x8x1xf32> to vector<4x8x8xf32>
    %32 = arith.mulf %31, %11 : vector<4x8x8xf32>
    "tpu.trace_start"() <{level = 10 : i32, message = "hqk,hkd->hqd"}> : () -> ()
    %cst_16 = arith.constant dense<0.000000e+00> : vector<4x8x8xf32>
    %33 = tpu.matmul %26, %17, %cst_16 {dimension_numbers = #tpu.dot_dimension_numbers<[2], [1], [1], [2], [0, 0, 0, 1, 1, 2], [0], [0]>} : vector<4x8x8xf32>, vector<4x8x8xf32>, vector<4x8x8xf32> -> vector<4x8x8xf32>
    "tpu.trace_stop"() : () -> ()
    %34 = arith.addf %32, %33 : vector<4x8x8xf32>
    %c1_i32 = arith.constant 1 : i32
    %35 = tpu.reciprocal %30 {approx = true} : vector<4x8x1xf32> -> vector<4x8x1xf32>
    %36 = arith.mulf %30, %35 : vector<4x8x1xf32>
    %cst_17 = arith.constant 2.000000e+00 : f32
    %37 = vector.broadcast %cst_17 : f32 to vector<4x8x1xf32>
    %38 = arith.subf %37, %36 : vector<4x8x1xf32>
    %39 = arith.mulf %35, %38 : vector<4x8x1xf32>
    %40 = vector.broadcast %39 : vector<4x8x1xf32> to vector<4x8x8xf32>
    %41 = arith.mulf %34, %40 : vector<4x8x8xf32>
    %42 = tpu.transpose %41, [1, 0, 2] : vector<4x8x8xf32> -> vector<8x4x8xf32>
    %43 = vector.shape_cast %42 : vector<8x4x8xf32> to vector<8x32xf32>
    %c0_18 = arith.constant 0 : index
    %c0_19 = arith.constant 0 : index
    %44 = vector.load %arg6[%c0_18, %c0_19] : memref<32x128xf32, #tpu.memory_space<vmem>>, vector<32x128xf32>
    %cst_20 = arith.constant dense<0.000000e+00> : vector<8x128xf32>
    %45 = tpu.matmul %43, %44, %cst_20 {dimension_numbers = #tpu.dot_dimension_numbers<[1], [0], [0], [1], [0, 0, 1, 1], [], []>} : vector<8x32xf32>, vector<32x128xf32>, vector<8x128xf32> -> vector<8x128xf32>
    %c0_21 = arith.constant 0 : index
    %c0_22 = arith.constant 0 : index
    %46 = vector.load %arg7[%c0_21, %c0_22] : memref<1x128xf32, #tpu.memory_space<vmem>>, vector<1x128xf32>
    %47 = vector.broadcast %46 : vector<1x128xf32> to vector<8x128xf32>
    %48 = arith.addf %45, %47 : vector<8x128xf32>
    %c0_23 = arith.constant 0 : index
    %c0_24 = arith.constant 0 : index
    %c0_25 = arith.constant 0 : index
    %49 = vector.load %arg8[%c0_23, %c0_24, %c0_25] : memref<1x8x128xf32, #tpu.memory_space<vmem>>, vector<1x8x128xf32>
    %50 = vector.shape_cast %49 : vector<1x8x128xf32> to vector<8x128xf32>
    %51 = vector.shape_cast %48 : vector<8x128xf32> to vector<1x8x128xf32>
    tpu.vector_store %arg8[%c0_23, %c0_24, %c0_25], %51 {strides = array<i32>} : memref<1x8x128xf32, #tpu.memory_space<vmem>>, vector<1x8x128xf32>,
    return
  }
  func.func @transform_0(%arg0: i32, %arg1: i32) -> (i32, i32, i32) {
    %c0_i32 = arith.constant 0 : i32
    %c0_i32_0 = arith.constant 0 : i32
    %c0_i32_1 = arith.constant 0 : i32
    return %arg0, %c0_i32, %c0_i32_0 : i32, i32, i32
  }
  func.func @transform_1(%arg0: i32, %arg1: i32) -> (i32, i32) {
    %c0_i32 = arith.constant 0 : i32
    %c0_i32_0 = arith.constant 0 : i32
    %c0_i32_1 = arith.constant 0 : i32
    return %c0_i32, %c0_i32_0 : i32, i32
  }
  func.func @transform_2(%arg0: i32, %arg1: i32) -> (i32, i32) {
    %c0_i32 = arith.constant 0 : i32
    %c0_i32_0 = arith.constant 0 : i32
    %c0_i32_1 = arith.constant 0 : i32
    return %c0_i32, %c0_i32_0 : i32, i32
  }
  func.func @transform_3(%arg0: i32, %arg1: i32) -> (i32, i32) {
    %c0_i32 = arith.constant 0 : i32
    %c0_i32_0 = arith.constant 0 : i32
    %c0_i32_1 = arith.constant 0 : i32
    return %c0_i32, %c0_i32_0 : i32, i32
  }
  func.func @transform_4(%arg0: i32, %arg1: i32) -> (i32, i32) {
    %c0_i32 = arith.constant 0 : i32
    %c0_i32_0 = arith.constant 0 : i32
    %c0_i32_1 = arith.constant 0 : i32
    return %c0_i32, %c0_i32_0 : i32, i32
  }
  func.func @transform_5(%arg0: i32, %arg1: i32) -> (i32, i32) {
    %c0_i32 = arith.constant 0 : i32
    %c0_i32_0 = arith.constant 0 : i32
    %c0_i32_1 = arith.constant 0 : i32
    return %c0_i32, %c0_i32_0 : i32, i32
  }
  func.func @transform_6(%arg0: i32, %arg1: i32) -> (i32, i32, i32) {
    %c0_i32 = arith.constant 0 : i32
    %c0_i32_0 = arith.constant 0 : i32
    return %arg0, %arg1, %c0_i32 : i32, i32, i32
  }
}

</mosaic_0001>

<bundles_post_ra>
// kernel: tpu_custom_call.1
= control target key start
LH: loop header
LB: loop body
LE: loop exit
PB: predicated region body
PF: predicated region fallthrough
CT: control target
= control target key end

     0   :  { %11 = vsyncpa [#allocation5], 0  ;;  %s2979_s0 = inlined_call_operand.vmem [shape: f32[2,8,128], index: 0, kind: input, shape index: {}]   ;;  %s2980_s1 = inlined_call_operand.vmem [shape: f32[128,32], index: 1, kind: input, shape index: {}]   ;;  %s2981_s2 = inlined_call_operand.vmem [shape: f32[128,32], index: 2, kind: input, shape index: {}]   ;;  %s2982_s3 = inlined_call_operand.vmem [shape: f32[128,32], index: 3, kind: input, shape index: {}]   ;;  %s2983_s4 = inlined_call_operand.vmem [shape: f32[32,128], index: 4, kind: input, shape index: {}]   ;;  %s2984_s5 = inlined_call_operand.vmem [shape: f32[1,128], index: 5, kind: input, shape index: {}]   ;;  %s2985_s6 = inlined_call_operand.hbm [shape: f32[2,8,128], index: 6, kind: output, shape index: {}]  }
   0x1   :  { %13 = vsyncpa [#allocation5 + $0x1], 0  ;;  %s2539_s21 = smov 0   ;;  %s2541_s22 = smov 0  }
   0x2   :  { %s2543_s23 = smov 0   ;;  %s2545_s24 = smov 0  }
   0x3   :  { %s2547_s25 = smov 0   ;;  %s2549_s26 = smov 0  }
   0x4 LB: > { %s1983_s27 = sadd.s32 4294967295, %s2490_s26   ;;  %s1984_s28 = sadd.s32 4294967294, %s2490_s26   ;;  %s2490_s26 = sphi %s2549_s26, %s19_s26   ;;  %s2486_s25 = sphi %s2547_s25, %s2992_s25   ;;  %s2482_s24 = sphi %s2545_s24, %s2991_s24   ;;  %s2478_s23 = sphi %s2543_s23, %s2990_s23   ;;  %s2474_s22 = sphi %s2541_s22, %s2989_s22   ;;  %s2470_s21 = sphi %s2539_s21, %s2988_s21  }
   0x5   : > { %s31_s29 = sadd.s32 1, %s2486_s25  ;;  %s171_s30 = sadd.s32 1, %s2478_s23 }
   0x6   : > { %p33_p0 = scmp.ge.s32.totalorder %s31_s29, 2  ;;  %p181_p1 = scmp.ne.s32.totalorder %s2478_s23, %s2474_s22 }
   0x7   : > { %p182_p2 = scmp.eq.s32.totalorder %s1983_s27, 1  ;;  %p187_p3 = scmp.ne.s32.totalorder %s2474_s22, %s2470_s21 }
   0x8   : > { %s2994_s29 = smov (%p33_p0, %s31_s29), 0  ;;  %p188_p5 = scmp.eq.s32.totalorder %s1984_s28, 1 }
   0x9   : > { %p2579_p4 = por %p182_p2, %p181_p1  ;;  %s166_s8 = ssub.s32 %s2486_s25, %s2994_s29 }
   0xa   : > { %p1987_p6 = scmp.ge.s32.totalorder %s2490_s26, 1  ;;  %p169_p7 = scmp.eq.s32.totalorder %s166_s8, 0 }
   0xb   : > { %p2586_p8 = por %p188_p5, %p187_p3  ;;  %p228_p9 = scmp.lt.s32.totalorder %s2490_s26, 3 }
   0xc   : > { %s2592_s10 = scalar_select %p169_p7, %s2478_s23, %s171_s30  }
   0xd   : > { %p229_p10 = pnand %p1987_p6, %p228_p9 }
   0xe   : > { %v266_v0 = vld [vmem:[%s2981_s2] sm:$0xff] (!%p229_p10)  ;;  %v267_v1 = vld [vmem:[%s2981_s2 + $0x8] sm:$0xff] (!%p229_p10)  ;;  %v268_v2 = vld [vmem:[%s2981_s2 + $0x10] sm:$0xff] (!%p229_p10)  ;;  %v2492_v3 = vmov (!%p229_p10), 0.0|0.0   ;;  %vm2493_vm0 = vmmov (!%p229_p10), 0   ;;  %v2494_v6 = vmov (!%p229_p10), 0.0  }
   0xf   : > { %232 = sbr.rel (%p229_p10) target bundleno = 1395 (0x573), region = 44  ;;  %2244 = vmatprep.subr.bf16.mxu0 (!%p229_p10), %v2492_v3  ;;  %v2245_v4 = vpack.c.bf16 (!%p229_p10), %v267_v1, %v266_v0  ;;  %v269_v5 = vld [vmem:[%s2981_s2 + $0x18] sm:$0xff] (!%p229_p10)  ;;  %2120 = vmatprep.mubr.msk.f32.mxu0 (!%p229_p10), %vm2493_vm0, %v2494_v6  ;;  %v270_v8 = vld [vmem:[%s2981_s2 + $0x20] sm:$0xff] (!%p229_p10)  ;;  %v271_v9 = vld [vmem:[%s2981_s2 + $0x28] sm:$0xff] (!%p229_p10)  ;;  %p257_p11 = scmp.lt.s32.totalorder (!%p229_p10), %s2482_s24, 1  ;;  %vm584_vm1 = vcmask (!%p229_p10), 64512  }
  0x10   : > { %2268 = vmatprep.subr.bf16.mxu1 (!%p229_p10), %v2492_v3  ;;  %2155 = vmatprep.mubr.msk.f32.mxu1 (!%p229_p10), %vm2493_vm0, %v2494_v6  ;;  %v2248_v7 = vpack.c.bf16 (!%p229_p10), %v269_v5, %v268_v2  ;;  %v2251_v10 = vpack.c.bf16 (!%p229_p10), %v271_v9, %v270_v8  ;;  %v272_v11 = vld [vmem:[%s2981_s2 + $0x30] sm:$0xff] (!%p229_p10)  ;;  %v273_v12 = vld [vmem:[%s2981_s2 + $0x38] sm:$0xff] (!%p229_p10)  ;;  %v352_v14 = vld [vmem:[%s2982_s3] sm:$0xff] (!%p229_p10)  ;;  %s2495_s15 = smov (!%p229_p10), 120   ;;  %s2497_s16 = smov (!%p229_p10), 112   ;;  %vm1810_vm2 = vcmask (!%p229_p10), 130048  }
  0x11   : > { %2246 = vmatpush3.bf16.msra.mxu0 (!%p229_p10), %v2245_v4  ;;  %v2254_v13 = vpack.c.bf16 (!%p229_p10), %v273_v12, %v272_v11  ;;  %v353_v15 = vld [vmem:[%s2982_s3 + $0x8] sm:$0xff] (!%p229_p10)  ;;  %v354_v16 = vld [vmem:[%s2982_s3 + $0x10] sm:$0xff] (!%p229_p10)  ;;  %v274_v17 = vld [vmem:[%s2981_s2 + $0x40] sm:$0xff] (!%p229_p10)  ;;  %s2500_s11 = smov (!%p229_p10), 16   ;;  %s2501_s12 = smov (!%p229_p10), 8   ;;  %vm1812_vm3 = vcmask (!%p229_p10), 195584  }
  0x12   : > { %2247 = vmatprep.subr.bf16.mxu0 (!%p229_p10), %v2492_v3  ;;  %v275_v18 = vld [vmem:[%s2981_s2 + $0x48] sm:$0xff] (!%p229_p10)  ;;  %v2269_v19 = vpack.c.bf16 (!%p229_p10), %v353_v15, %v352_v14  ;;  %v355_v20 = vld [vmem:[%s2982_s3 + $0x18] sm:$0xff] (!%p229_p10)  ;;  %v356_v23 = vld [vmem:[%s2982_s3 + $0x20] sm:$0xff] (!%p229_p10)  ;;  %s2502_s14 = smov (!%p229_p10), 24   ;;  %vm1825_vm4 = vcmask (!%p229_p10), 261120   ;;  %s2013_s18 = sshll.u32 (!%p229_p10), %s2482_s24, 7 }
  0x13   : > { %v2272_v21 = vpack.c.bf16 (!%p229_p10), %v355_v20, %v354_v16  ;;  %v2257_v22 = vpack.c.bf16 (!%p229_p10), %v275_v18, %v274_v17  ;;  %v357_v24 = vld [vmem:[%s2982_s3 + $0x28] sm:$0xff] (!%p229_p10)  ;;  %v276_v25 = vld [vmem:[%s2981_s2 + $0x50] sm:$0xff] (!%p229_p10)  ;;  %v277_v26 = vld [vmem:[%s2981_s2 + $0x58] sm:$0xff] (!%p229_p10)  ;;  %s2932_s30 = scalar_lea.hbm (!%p229_p10), %s2985_s6, %s2013_s18 }
  0x14   : > { %2270 = vmatpush3.bf16.msra.mxu1 (!%p229_p10), %v2269_v19  ;;  %v2275_v27 = vpack.c.bf16 (!%p229_p10), %v357_v24, %v356_v23  ;;  %v2260_v28 = vpack.c.bf16 (!%p229_p10), %v277_v26, %v276_v25  ;;  %v358_v29 = vld [vmem:[%s2982_s3 + $0x30] sm:$0xff] (!%p229_p10)  ;;  %v359_v30 = vld [vmem:[%s2982_s3 + $0x38] sm:$0xff] (!%p229_p10)  ;;  %v278_v31 = vld [vmem:[%s2981_s2 + $0x60] sm:$0xff] (!%p229_p10)  ;;  %v2498_v19 = vmov (!%p229_p10), 1983009808  }
  0x15   : > { %2249 = vmatpush3.bf16.msra.mxu0 (!%p229_p10), %v2248_v7  ;;  %2271 = vmatprep.subr.bf16.mxu1 (!%p229_p10), %v2492_v3  ;;  %v279_v32 = vld [vmem:[%s2981_s2 + $0x68] sm:$0xff] (!%p229_p10)  ;;  %v2278_v33 = vpack.c.bf16 (!%p229_p10), %v359_v30, %v358_v29  ;;  %v360_v35 = vld [vmem:[%s2982_s3 + $0x40] sm:$0xff] (!%p229_p10)  ;;  %v280_v37 = vld [vmem:[%s2981_s2 + $0x70] sm:$0xff] (!%p229_p10)  ;;  %v451_v20 = vunpack.c.l.s4 (!%p229_p10), %v2498_v19 }
  0x16   : > { %2250 = vmatprep.subr.bf16.mxu0 %v2492_v3  ;;  %s258_s13 = scalar_select %p257_p11, %s2482_s24, 1  ;;  %v2263_v34 = vpack.c.bf16 %v279_v32, %v278_v31  ;;  %v361_v36 = vld [vmem:[%s2982_s3 + $0x48] sm:$0xff]  ;;  %v281_v38 = vld [vmem:[%s2981_s2 + $0x78] sm:$0xff]  ;;  %v362_v41 = vld [vmem:[%s2982_s3 + $0x50] sm:$0xff] }
  0x17   : > { %v2281_v39 = vpack.c.bf16 %v361_v36, %v360_v35  ;;  %v2266_v40 = vpack.c.bf16 %v281_v38, %v280_v37  ;;  %v363_v42 = vld [vmem:[%s2982_s3 + $0x58] sm:$0xff]  ;;  %v740_v43 = vld [vmem:[%s2980_s1] sm:$0xff]  ;;  %v741_v44 = vld [vmem:[%s2980_s1 + $0x8] sm:$0xff]  ;;  %v452_v24 = vunpack.c.0.s8 %v451_v20  ;;  %s2503_s24 = smov [#allocation4]  }
  0x18   : > { %2273 = vmatpush3.bf16.msra.mxu1 %v2272_v21  ;;  %s1989_s28 = sshll.u32 %s258_s13, 3  ;;  %v2284_v45 = vpack.c.bf16 %v363_v42, %v362_v41  ;;  %v2293_v47 = vpack.c.bf16 %v741_v44, %v740_v43  ;;  %v742_v48 = vld [vmem:[%s2980_s1 + $0x10] sm:$0xff]  ;;  %v743_v49 = vld [vmem:[%s2980_s1 + $0x18] sm:$0xff]  ;;  %v744_v51 = vld [vmem:[%s2980_s1 + $0x20] sm:$0xff]  ;;  %v453_v21 = vlaneseq }
  0x19   : > { %2252 = vmatpush3.bf16.msra.mxu0 %v2251_v10  ;;  %2274 = vmatprep.subr.bf16.mxu1 %v2492_v3  ;;  %s260_s13 = scalar_lea.vmem %s2979_s0, %s1989_s28  ;;  %v2296_v50 = vpack.c.bf16 %v743_v49, %v742_v48  ;;  %v745_v52 = vld [vmem:[%s2980_s1 + $0x28] sm:$0xff]  ;;  %v746_v54 = vld [vmem:[%s2980_s1 + $0x30] sm:$0xff]  ;;  %v747_v55 = vld [vmem:[%s2980_s1 + $0x38] sm:$0xff] }
  0x1a   : > { %2253 = vmatprep.subr.bf16.mxu0 %v2492_v3  ;;  %v265_v46 = vld [vmem:[%s260_s13] sm:$0xff]  ;;  %v2299_v53 = vpack.c.bf16 %v745_v52, %v744_v51  ;;  %v2302_v56 = vpack.c.bf16 %v747_v55, %v746_v54  ;;  %v749_v58 = vld [vmem:[%s2980_s1 + $0x48] sm:$0xff]  ;;  %v750_v60 = vld [vmem:[%s2980_s1 + $0x50] sm:$0xff]  ;;  %s2496_s13 = smov 104   ;;  %v454_v25 = vshrl.u32 %v453_v21, 7 }
  0x1b   : > { %v748_v57 = vld [vmem:[%s2980_s1 + $0x40] sm:$0xff]  ;;  %v751_v61 = vld [vmem:[%s2980_s1 + $0x58] sm:$0xff]  ;;  %v753_v0 = vld [vmem:[%s2980_s1 + $0x68] sm:$0xff] }
  0x1c   : > { %2276 = vmatpush3.bf16.msra.mxu1 %v2275_v27  ;;  %v2305_v59 = vpack.c.bf16 %v749_v58, %v748_v57  ;;  %v2308_v62 = vpack.c.bf16 %v751_v61, %v750_v60  ;;  %v752_v63 = vld [vmem:[%s2980_s1 + $0x60] sm:$0xff]  ;;  %v754_v2 = vld [vmem:[%s2980_s1 + $0x70] sm:$0xff]  ;;  %v755_v4 = vld [vmem:[%s2980_s1 + $0x78] sm:$0xff]  ;;  %v2789_v29 = vsub.s32 %v452_v24, %v454_v25 }
  0x1d   : > { %2255 = vmatpush3.bf16.msra.mxu0 %v2254_v13  ;;  %2277 = vmatprep.subr.bf16.mxu1 %v2492_v3  ;;  %v2311_v1 = vpack.c.bf16 %v753_v0, %v752_v63  ;;  %v2314_v5 = vpack.c.bf16 %v755_v4, %v754_v2  ;;  %v364_v7 = vld [vmem:[%s2982_s3 + $0x60] sm:$0xff]  ;;  %v365_v8 = vld [vmem:[%s2982_s3 + $0x68] sm:$0xff]  ;;  %v366_v10 = vld [vmem:[%s2982_s3 + $0x70] sm:$0xff] }
  0x1e   : > { %2256 = vmatprep.subr.bf16.mxu0 %v2492_v3  ;;  %v2287_v9 = vpack.c.bf16 %v365_v8, %v364_v7  ;;  %v367_v11 = vld [vmem:[%s2982_s3 + $0x78] sm:$0xff] }
  0x1f   : > { %v2290_v12 = vpack.c.bf16 %v367_v11, %v366_v10 }
  0x20   : > { %2279 = vmatpush3.bf16.msra.mxu1 %v2278_v33 }
  0x21   : > { %2258 = vmatpush3.bf16.msra.mxu0 %v2257_v22  ;;  %2280 = vmatprep.subr.bf16.mxu1 %v2492_v3  ;;  %v2499_v22 = vmov 1934713408  }
  0x22   : > { %2259 = vmatprep.subr.bf16.mxu0 %v2492_v3  ;;  %v483_v23 = vunpack.c.l.s4 %v2499_v22 }
  0x24   : > { %2282 = vmatpush3.bf16.msra.mxu1 %v2281_v39 }
  0x25   : > { %2261 = vmatpush3.bf16.msra.mxu0 %v2260_v28  ;;  %2283 = vmatprep.subr.bf16.mxu1 %v2492_v3  ;;  %v484_v28 = vunpack.c.0.s8 %v483_v23 }
  0x26   : > { %2262 = vmatprep.subr.bf16.mxu0 %v2492_v3 }
  0x27   : > { %v2791_v35 = vsub.s32 %v484_v28, %v454_v25 }
  0x28   : > { %2285 = vmatpush3.bf16.msra.mxu1 %v2284_v45 }
  0x29   : > { %2264 = vmatpush3.bf16.msra.mxu0 %v2263_v34  ;;  %2286 = vmatprep.subr.bf16.mxu1 %v2492_v3 }
  0x2a   : > { %2265 = vmatprep.subr.bf16.mxu0 %v2492_v3 }
  0x2c   : > { %2288 = vmatpush3.bf16.msra.mxu1 %v2287_v9 }
  0x2d   : > { %2267 = vmatpush3.bf16.msra.mxu0 %v2266_v40  ;;  %2289 = vmatprep.subr.bf16.mxu1 %v2492_v3 }
  0x2e   : > { %2292 = vmatprep.subr.bf16.mxu0 %v2492_v3 }
  0x30   : > { %2121 = vmatmul.mubr.f32.vlgmr.msra.gmra.mrb[0].mxu0 %v265_v46  ;;  %2291 = vmatpush3.bf16.msra.mxu1 %v2290_v12 }
  0x31   : > { %2294 = vmatpush3.bf16.msra.mxu0 %v2293_v47  ;;  %2190 = vmatprep.mubr.msk.f32.mxu0 %vm2493_vm0, %v2494_v6 }
  0x32   : > { %2295 = vmatprep.subr.bf16.mxu0 %v2492_v3  ;;  %2193 = vmatprep.subr.mxu1 %v2494_v6 }
  0x33   : > { %2156 = vmatmul.mubr.f32.vlgmr.msra.gmra.mrb[0].mxu1 %v265_v46 }
  0x34   : > { %2195 = vmatprep.mubr.msk.f32.mxu1 %vm2493_vm0, %v2494_v6 }
  0x35   : > { %2297 = vmatpush3.bf16.msra.mxu0 %v2296_v50 }
  0x36   : > { %2298 = vmatprep.subr.bf16.mxu0 %v2492_v3 }
  0x39   : > { %2300 = vmatpush3.bf16.msra.mxu0 %v2299_v53 }
  0x3a   : > { %2301 = vmatprep.subr.bf16.mxu0 %v2492_v3 }
  0x3d   : > { %2303 = vmatpush3.bf16.msra.mxu0 %v2302_v56 }
  0x3e   : > { %2304 = vmatprep.subr.bf16.mxu0 %v2492_v3 }
  0x41   : > { %2306 = vmatpush3.bf16.msra.mxu0 %v2305_v59 }
  0x42   : > { %2307 = vmatprep.subr.bf16.mxu0 %v2492_v3 }
  0x45   : > { %2309 = vmatpush3.bf16.msra.mxu0 %v2308_v62 }
  0x46   : > { %2310 = vmatprep.subr.bf16.mxu0 %v2492_v3 }
  0x49   : > { %2312 = vmatpush3.bf16.msra.mxu0 %v2311_v1 }
  0x4a   : > { %2313 = vmatprep.subr.bf16.mxu0 %v2492_v3 }
  0x4d   : > { %2315 = vmatpush3.bf16.msra.mxu0 %v2314_v5 }
  0x4e   : > { %2316 = vmatprep.subr.bf16.mxu0 %v2492_v3 }
  0x50   : > { %2191 = vmatmul.mubr.f32.vlgmr.msra.gmra.mrb[2].mxu0 %v265_v46 }
  0x51   : > { %2241 = vmatprep.mubr.msk.f32.mxu0 %vm2493_vm0, %v2494_v6 }
 0x103   : > { %v348_v13 = vpop.f32.mrb[0].mxu0 }
 0x104   : > { %439 = vrot.lane.b32.xlu0 %v348_v13, %s2495_s15  ;;  %v2122_v14 = vpop.f32.mrb[1].mxu0  ;;  %445 = vrot.lane.b32.xlu1 %v348_v13, %s2496_s13 }
 0x106   : > { %v2784_v17 = vpop.f32.mrb[0].mxu1 }
 0x107   : > { %v2157_v18 = vpop.f32.mrb[1].mxu1 }
 0x108   : > { %442 = vrot.lane.b32.xlu0 %v348_v13, %s2497_s16 }
 0x123   : > { %v2779_v15 = vpop.f32.mrb[2].mxu0 }
 0x124   : > { %830 = vrot.lane.b32.xlu0 %v2779_v15, %s2497_s16  ;;  %827 = vrot.lane.b32.xlu1 %v2779_v15, %s2495_s15  ;;  %v2192_v16 = vpop.f32.mrb[3].mxu0 }
 0x128   : > { %833 = vrot.lane.b32.xlu1 %v2779_v15, %s2496_s13 }
 0x12c   : > { %590 = vrot.lane.b32.xlu1 %v2784_v17, %s2495_s15  ;;  %s254_s15 = sand.u32 1, %s2474_s22  }
 0x12d   : > { %s1901_s8 = scalar_lea.sflag [#allocation5], %s254_s15 }
 0x130   : > { %593 = vrot.lane.b32.xlu1 %v2784_v17, %s2497_s16 }
 0x134   : > { %596 = vrot.lane.b32.xlu1 %v2784_v17, %s2496_s13  ;;  %s1988_s13 = sshll.u32 %s254_s15, 3 }
 0x135   : > { %s256_s19 = scalar_lea.vmem [#allocation4], %s1988_s13 }
 0x136   : > { %s1915_s20 = sshll.u32 %s256_s19, 4  ;;  %s2934_s20 = int_to_ptr.vmem [resolvable:$true] %s1915_s20 }
 0x176   : > { %v440_v26 = vpop.permute.xlu0 %439  ;;  %v446_v27 = vpop.permute.xlu1 %445 }
 0x177   : > { %v464_v30 = vcombine.low %v440_v26, %v446_v27  ;;  %v465_v31 = vcombine.high %v440_v26, %v446_v27 }
 0x179   : > { %v472_v36 = vrot.slane %v464_v30, %v2789_v29  ;;  %v479_v37 = vrot.slane %v465_v31, %v2789_v29 }
 0x17a   : > { %v443_v32 = vpop.permute.xlu0 %442 }
 0x17b   : > { %v448_v33 = vcombine.low %v348_v13, %v443_v32  ;;  %v449_v34 = vcombine.high %v348_v13, %v443_v32 }
 0x17d   : > { %v456_v38 = vrot.slane %v448_v33, %v2789_v29  ;;  %v463_v39 = vrot.slane %v449_v34, %v2789_v29 }
 0x17f   : > { %v480_v40 = vcombine.low %v456_v38, %v472_v36  ;;  %v481_v41 = vcombine.high %v456_v38, %v472_v36  ;;  %v496_v42 = vcombine.low %v463_v39, %v479_v37  ;;  %v497_v43 = vcombine.high %v463_v39, %v479_v37 }
 0x181   : > { %v488_v44 = vrot.slane %v480_v40, %v2791_v35  ;;  %v495_v45 = vrot.slane %v481_v41, %v2791_v35  ;;  %v504_v46 = vrot.slane %v496_v42, %v2791_v35  ;;  %v511_v47 = vrot.slane %v497_v43, %v2791_v35 }
 0x183   : > { %v516_v48 = vcombine.low %v488_v44, %v495_v45  ;;  %v1990_v49 = vcombine.high %v488_v44, %v495_v45  ;;  %v532_v50 = vcombine.low %v504_v46, %v511_v47  ;;  %v1991_v51 = vcombine.high %v504_v46, %v511_v47 }
 0x185   : > { %v523_v52 = vrot.slane %v516_v48, %v2789_v29  ;;  %v531_v53 = vrot.slane %v1990_v49, %v2789_v29  ;;  %v539_v54 = vrot.slane %v532_v50, %v2789_v29  ;;  %v547_v55 = vrot.slane %v1991_v51, %v2789_v29 }
 0x187   : > { %v548_v56 = vcombine.low %v523_v52, %v531_v53  ;;  %v549_v57 = vcombine.high %v523_v52, %v531_v53  ;;  %v564_v58 = vcombine.low %v539_v54, %v547_v55  ;;  %v565_v59 = vcombine.high %v539_v54, %v547_v55 }
 0x189   : > { %v556_v60 = vrot.slane %v548_v56, %v2791_v35  ;;  %v563_v61 = vrot.slane %v549_v57, %v2791_v35  ;;  %v572_v62 = vrot.slane %v564_v58, %v2791_v35  ;;  %v579_v63 = vrot.slane %v565_v59, %v2791_v35 }
 0x18b   : > { %v580_v0 = vcombine.low %v556_v60, %v572_v62  ;;  %v581_v1 = vcombine.high %v556_v60, %v572_v62  ;;  %v582_v2 = vcombine.low %v563_v61, %v579_v63  ;;  %v583_v4 = vcombine.high %v563_v61, %v579_v63 }
 0x18d   : > { %585 = vst.msk [vmem:[#allocation2] sm:$0xff] %vm584_vm1, %v580_v0  ;;  %586 = vst.msk [vmem:[#allocation2 + $0x8] sm:$0xff] %vm584_vm1, %v581_v1 }
 0x18e   : > { %587 = vst.msk [vmem:[#allocation2 + $0x10] sm:$0xff] %vm584_vm1, %v582_v2  ;;  %588 = vst.msk [vmem:[#allocation2 + $0x18] sm:$0xff] %vm584_vm1, %v583_v4 }
 0x194   : > { %v972_v5 = vld [vmem:[#allocation2] sm:$0xff]  ;;  %v973_v44 = vld [vmem:[#allocation2 + $0x8] sm:$0xff] }
 0x195   : > { %2194 = vmatpush3.xpose.msk.msra.mxu1 %vm584_vm1, %v972_v5  ;;  %v974_v48 = vld [vmem:[#allocation2 + $0x10] sm:$0xff]  ;;  %v975_v50 = vld [vmem:[#allocation2 + $0x18] sm:$0xff] }
 0x196   : > { %v831_v7 = vpop.permute.xlu0 %830  ;;  %v828_v8 = vpop.permute.xlu1 %827  ;;  %2198 = vmatprep.subr.mxu1 %v2494_v6 }
 0x197   : > { %v836_v9 = vcombine.low %v2779_v15, %v831_v7  ;;  %v837_v10 = vcombine.high %v2779_v15, %v831_v7 }
 0x199   : > { %v844_v14 = vrot.slane %v836_v9, %v2789_v29  ;;  %v851_v16 = vrot.slane %v837_v10, %v2789_v29 }
 0x19a   : > { %v834_v11 = vpop.permute.xlu1 %833 }
 0x19b   : > { %v852_v12 = vcombine.low %v828_v8, %v834_v11  ;;  %v853_v13 = vcombine.high %v828_v8, %v834_v11 }
 0x19d   : > { %v860_v18 = vrot.slane %v852_v12, %v2789_v29  ;;  %v867_v19 = vrot.slane %v853_v13, %v2789_v29 }
 0x19e   : > { %v591_v52 = vpop.permute.xlu1 %590 }
 0x19f   : > { %v868_v20 = vcombine.low %v844_v14, %v860_v18  ;;  %v869_v21 = vcombine.high %v844_v14, %v860_v18  ;;  %v884_v22 = vcombine.low %v851_v16, %v867_v19  ;;  %v885_v23 = vcombine.high %v851_v16, %v867_v19 }
 0x1a1   : > { %v876_v24 = vrot.slane %v868_v20, %v2791_v35  ;;  %v883_v25 = vrot.slane %v869_v21, %v2791_v35  ;;  %v892_v15 = vrot.slane %v884_v22, %v2791_v35  ;;  %v899_v26 = vrot.slane %v885_v23, %v2791_v35 }
 0x1a2   : > { %v594_v53 = vpop.permute.xlu1 %593 }
 0x1a3   : > { %v904_v27 = vcombine.low %v876_v24, %v883_v25  ;;  %v1994_v28 = vcombine.high %v876_v24, %v883_v25  ;;  %v920_v30 = vcombine.low %v892_v15, %v899_v26  ;;  %v1995_v31 = vcombine.high %v892_v15, %v899_v26 }
 0x1a4   : > { %v599_v54 = vcombine.low %v2784_v17, %v594_v53  ;;  %v600_v55 = vcombine.high %v2784_v17, %v594_v53 }
 0x1a5   : > { %v911_v32 = vrot.slane %v904_v27, %v2789_v29  ;;  %v919_v33 = vrot.slane %v1994_v28, %v2789_v29  ;;  %v927_v34 = vrot.slane %v920_v30, %v2789_v29  ;;  %v935_v36 = vrot.slane %v1995_v31, %v2789_v29 }
 0x1a6   : > { %v597_v56 = vpop.permute.xlu1 %596  ;;  %v607_v57 = vrot.slane %v599_v54, %v2789_v29  ;;  %v614_v58 = vrot.slane %v600_v55, %v2789_v29 }
 0x1a7   : > { %v936_v37 = vcombine.low %v911_v32, %v919_v33  ;;  %v952_v38 = vcombine.low %v927_v34, %v935_v36  ;;  %v937_v41 = vcombine.high %v911_v32, %v919_v33  ;;  %v953_v42 = vcombine.high %v927_v34, %v935_v36 }
 0x1a8   : > { %v615_v59 = vcombine.low %v591_v52, %v597_v56  ;;  %v616_v60 = vcombine.high %v591_v52, %v597_v56 }
 0x1a9   : > { %v944_v39 = vrot.slane %v936_v37, %v2791_v35  ;;  %v960_v40 = vrot.slane %v952_v38, %v2791_v35  ;;  %v951_v46 = vrot.slane %v937_v41, %v2791_v35  ;;  %v967_v47 = vrot.slane %v953_v42, %v2791_v35 }
 0x1aa   : > { %v623_v61 = vrot.slane %v615_v59, %v2789_v29  ;;  %v630_v62 = vrot.slane %v616_v60, %v2789_v29 }
 0x1ab   : > { %v968_v43 = vcombine.low %v944_v39, %v960_v40  ;;  %v969_v45 = vcombine.high %v944_v39, %v960_v40  ;;  %v970_v49 = vcombine.low %v951_v46, %v967_v47  ;;  %v971_v51 = vcombine.high %v951_v46, %v967_v47 }
 0x1ac   : > { %v631_v63 = vcombine.low %v607_v57, %v623_v61  ;;  %v632_v0 = vcombine.high %v607_v57, %v623_v61  ;;  %v647_v1 = vcombine.low %v614_v58, %v630_v62  ;;  %v648_v2 = vcombine.high %v614_v58, %v630_v62 }
 0x1ad   : > { %2196 = vmatmul.mubr.msk.f32.vlgmr.msra.gmra.mrb[2].mxu1 %vm584_vm1, %v968_v43 }
 0x1ae   : > { %2199 = vmatpush3.xpose.msk.msra.mxu1 %vm584_vm1, %v973_v44  ;;  %2200 = vmatprep.mubr.msk.f32.mxu1 %vm2493_vm0, %v2494_v6  ;;  %v639_v4 = vrot.slane %v631_v63, %v2791_v35  ;;  %v646_v5 = vrot.slane %v632_v0, %v2791_v35  ;;  %v655_v17 = vrot.slane %v647_v1, %v2791_v35 }
 0x1af   : > { %2203 = vmatprep.subr.mxu1 %v2494_v6  ;;  %v662_v7 = vrot.slane %v648_v2, %v2791_v35 }
 0x1b0   : > { %v667_v8 = vcombine.low %v639_v4, %v646_v5  ;;  %v1992_v9 = vcombine.high %v639_v4, %v646_v5 }
 0x1b1   : > { %2201 = vmatmul.mubr.msk.f32.vlgmr.msra.gmra.mrb[4].mxu1 %vm584_vm1, %v969_v45  ;;  %v683_v10 = vcombine.low %v655_v17, %v662_v7  ;;  %v1993_v11 = vcombine.high %v655_v17, %v662_v7 }
 0x1b2   : > { %2204 = vmatpush3.xpose.msk.msra.mxu1 %vm584_vm1, %v974_v48  ;;  %2205 = vmatprep.mubr.msk.f32.mxu1 %vm2493_vm0, %v2494_v6  ;;  %v674_v12 = vrot.slane %v667_v8, %v2789_v29  ;;  %v682_v13 = vrot.slane %v1992_v9, %v2789_v29  ;;  %v1814_v8 = vld [vmem:[%s2983_s4] sm:$0xff]  ;;  %v1815_v9 = vld [vmem:[%s2983_s4 + $0x8] sm:$0xff] }
 0x1b3   : > { %2208 = vmatprep.subr.mxu1 %v2494_v6  ;;  %v690_v14 = vrot.slane %v683_v10, %v2789_v29  ;;  %v698_v16 = vrot.slane %v1993_v11, %v2789_v29  ;;  %v2317_v10 = vpack.c.bf16 %v1815_v9, %v1814_v8 }
 0x1b4   : > { %v699_v18 = vcombine.low %v674_v12, %v682_v13  ;;  %v700_v19 = vcombine.high %v674_v12, %v682_v13 }
 0x1b5   : > { %2206 = vmatmul.mubr.msk.f32.vlgmr.msra.gmra.mrb[6].mxu1 %vm584_vm1, %v970_v49  ;;  %v715_v20 = vcombine.low %v690_v14, %v698_v16  ;;  %v716_v21 = vcombine.high %v690_v14, %v698_v16  ;;  %2318 = vmatpush3.bf16.msra.mxu0 %v2317_v10 }
 0x1b6   : > { %2209 = vmatpush3.xpose.msk.msra.mxu1 %vm584_vm1, %v975_v50  ;;  %2210 = vmatprep.mubr.msk.f32.mxu1 %vm2493_vm0, %v2494_v6  ;;  %v707_v22 = vrot.slane %v699_v18, %v2791_v35  ;;  %v714_v23 = vrot.slane %v700_v19, %v2791_v35 }
 0x1b7   : > { %2213 = vmatprep.subr.mxu1 %v2494_v6  ;;  %v723_v24 = vrot.slane %v715_v20, %v2791_v35  ;;  %v730_v25 = vrot.slane %v716_v21, %v2791_v35  ;;  %2319 = vmatprep.subr.bf16.mxu0 %v2492_v3 }
 0x1b9   : > { %2211 = vmatmul.mubr.msk.f32.vlgmr.msra.gmra.mrb[8].mxu1 %vm584_vm1, %v971_v51  ;;  %v731_v15 = vcombine.low %v707_v22, %v723_v24  ;;  %v732_v26 = vcombine.high %v707_v22, %v723_v24  ;;  %v733_v27 = vcombine.low %v714_v23, %v730_v25  ;;  %v734_v28 = vcombine.high %v714_v23, %v730_v25 }
 0x1ba   : > { %2215 = vmatprep.mubr.msk.f32.mxu1 %vm2493_vm0, %v2494_v6 }
 0x1bb   : > { %735 = vst.msk [vmem:[#allocation3] sm:$0xff] %vm584_vm1, %v731_v15  ;;  %736 = vst.msk [vmem:[#allocation3 + $0x8] sm:$0xff] %vm584_vm1, %v732_v26 }
 0x1bc   : > { %737 = vst.msk [vmem:[#allocation3 + $0x10] sm:$0xff] %vm584_vm1, %v733_v27  ;;  %738 = vst.msk [vmem:[#allocation3 + $0x18] sm:$0xff] %vm584_vm1, %v734_v28 }
 0x1c2   : > { %v976_v30 = vld [vmem:[#allocation3] sm:$0xff]  ;;  %v977_v61 = vld [vmem:[#allocation3 + $0x8] sm:$0xff] }
 0x1c3   : > { %2214 = vmatpush3.msra.mxu1 %v976_v30  ;;  %v978_v0 = vld [vmem:[#allocation3 + $0x10] sm:$0xff]  ;;  %v979_v4 = vld [vmem:[#allocation3 + $0x18] sm:$0xff] }
 0x1c4   : > { %2218 = vmatprep.subr.mxu1 %v2494_v6 }
 0x280   : > { %v1053_v31 = vpop.f32.mrb[2].mxu1 }
 0x281   : > { %v2197_v32 = vpop.f32.mrb[3].mxu1  ;;  %v1285_v33 = vsel %vm584_vm1, %v1053_v31, -inf }
 0x282   : > { %1286 = vmax.xlane.f32.xlu0 %v1285_v33 }
 0x284   : > { %v1129_v34 = vpop.f32.mrb[4].mxu1 }
 0x285   : > { %v2202_v36 = vpop.f32.mrb[5].mxu1  ;;  %v1288_v37 = vsel %vm584_vm1, %v1129_v34, -inf }
 0x286   : > { %1289 = vmax.xlane.f32.xlu1 %v1288_v37 }
 0x288   : > { %v1205_v38 = vpop.f32.mrb[6].mxu1 }
 0x289   : > { %v2207_v39 = vpop.f32.mrb[7].mxu1  ;;  %v1291_v40 = vsel %vm584_vm1, %v1205_v38, -inf }
 0x28a   : > { %1292 = vmax.xlane.f32.xlu0 %v1291_v40 }
 0x28c   : > { %v1281_v41 = vpop.f32.mrb[8].mxu1 }
 0x28d   : > { %v2212_v42 = vpop.f32.mrb[9].mxu1  ;;  %v1294_v43 = vsel %vm584_vm1, %v1281_v41, -inf }
 0x28e   : > { %1295 = vmax.xlane.f32.xlu0 %v1294_v43 }
 0x30f   : > { %v1287_v44 = vpop.xlane.xlu0 %1286 }
 0x310   : > { %v1297_v45 = vmax.f32 %v1287_v44, -1e+30 }
 0x312   : > { %v1313_v46 = vsub.f32 %v1053_v31, %v1297_v45  ;;  %v1301_v11 = vsub.f32 -1e+30, %v1297_v45 }
 0x313   : > { %v1290_v47 = vpop.xlane.xlu1 %1289 }
 0x314   : > { %v1317_v48 = vmul.f32 1.442695, %v1313_v46  ;;  %v1298_v49 = vmax.f32 %v1290_v47, -1e+30 }
 0x316   : > { %v1314_v50 = vsub.f32 %v1129_v34, %v1298_v49  ;;  %2388 = vpow2.f32 %v1317_v48  ;;  %v1302_v12 = vsub.f32 -1e+30, %v1298_v49 }
 0x317   : > { %v1293_v51 = vpop.xlane.xlu0 %1292 }
 0x318   : > { %v1319_v52 = vmul.f32 1.442695, %v1314_v50  ;;  %v1299_v53 = vmax.f32 %v1293_v51, -1e+30  ;;  %v1307_v13 = vmul.f32 1.442695, %v1302_v12 }
 0x31a   : > { %v1315_v54 = vsub.f32 %v1205_v38, %v1299_v53  ;;  %2390 = vpow2.f32 %v1319_v52  ;;  %v1303_v14 = vsub.f32 -1e+30, %v1299_v53 }
 0x31b   : > { %v1296_v55 = vpop.xlane.xlu0 %1295 }
 0x31c   : > { %v1321_v56 = vmul.f32 1.442695, %v1315_v54  ;;  %v1300_v57 = vmax.f32 %v1296_v55, -1e+30  ;;  %v1309_v16 = vmul.f32 1.442695, %v1303_v14 }
 0x31e   : > { %v1316_v58 = vsub.f32 %v1281_v41, %v1300_v57  ;;  %2392 = vpow2.f32 %v1321_v56  ;;  %v1304_v18 = vsub.f32 -1e+30, %v1300_v57 }
 0x320   : > { %v1323_v59 = vmul.f32 1.442695, %v1316_v58  ;;  %v2389_v60 = vpop.eup %2388  ;;  %v1311_v19 = vmul.f32 1.442695, %v1304_v18  ;;  %v1816_v18 = vld [vmem:[%s2983_s4 + $0x10] sm:$0xff] }
 0x321   : > { %2216 = vmatmul.mubr.msk.f32.vlgmr.msra.gmra.mrb[10].mxu1 %vm584_vm1, %v2389_v60  ;;  %v1329_v62 = vsel %vm584_vm1, %v2389_v60, 0.0 }
 0x322   : > { %2394 = vpow2.f32 %v1323_v59  ;;  %2219 = vmatpush3.msra.mxu1 %v977_v61  ;;  %1330 = vadd.xlane.f32.xlu0 %v1329_v62 }
 0x323   : > { %2220 = vmatprep.mubr.msk.f32.mxu1 %vm2493_vm0, %v2494_v6  ;;  %2223 = vmatprep.subr.mxu1 %v2494_v6 }
 0x324   : > { %v2391_v63 = vpop.eup %2390 }
 0x325   : > { %2221 = vmatmul.mubr.msk.f32.vlgmr.msra.gmra.mrb[12].mxu1 %vm584_vm1, %v2391_v63  ;;  %v1332_v1 = vsel %vm584_vm1, %v2391_v63, 0.0 }
 0x326   : > { %2224 = vmatpush3.msra.mxu1 %v978_v0  ;;  %1333 = vadd.xlane.f32.xlu0 %v1332_v1 }
 0x327   : > { %2225 = vmatprep.mubr.msk.f32.mxu1 %vm2493_vm0, %v2494_v6  ;;  %2228 = vmatprep.subr.mxu1 %v2494_v6 }
 0x328   : > { %v2393_v2 = vpop.eup %2392 }
 0x329   : > { %2226 = vmatmul.mubr.msk.f32.vlgmr.msra.gmra.mrb[14].mxu1 %vm584_vm1, %v2393_v2  ;;  %v1335_v5 = vsel %vm584_vm1, %v2393_v2, 0.0 }
 0x32a   : > { %2229 = vmatpush3.msra.mxu1 %v979_v4  ;;  %1336 = vadd.xlane.f32.xlu0 %v1335_v5 }
 0x32b   : > { %2230 = vmatprep.mubr.msk.f32.mxu1 %vm2493_vm0, %v2494_v6  ;;  %v1305_v6 = vmul.f32 1.442695, %v1301_v11 }
 0x32c   : > { %v2395_v17 = vpop.eup %2394 }
 0x32d   : > { %2231 = vmatmul.mubr.msk.f32.vlgmr.msra.gmra.mrb[16].mxu1 %vm584_vm1, %v2395_v17  ;;  %v1338_v7 = vsel %vm584_vm1, %v2395_v17, 0.0  ;;  %2396 = vpow2.f32 %v1305_v6 }
 0x32e   : > { %1339 = vadd.xlane.f32.xlu1 %v1338_v7  ;;  %2398 = vpow2.f32 %v1307_v13 }
 0x32f   : > { %2400 = vpow2.f32 %v1309_v16 }
 0x330   : > { %2402 = vpow2.f32 %v1311_v19  ;;  %v1817_v19 = vld [vmem:[%s2983_s4 + $0x18] sm:$0xff] }
 0x337   : > { %v2397_v21 = vpop.eup %2396 }
 0x338   : > { %v1325_v22 = vmul.f32 0.0, %v2397_v21  ;;  %v2399_v23 = vpop.eup %2398 }
 0x339   : > { %v1326_v15 = vmul.f32 0.0, %v2399_v23  ;;  %v2401_v3 = vpop.eup %2400 }
 0x33a   : > { %v1327_v28 = vmul.f32 0.0, %v2401_v3  ;;  %v2403_v30 = vpop.eup %2402 }
 0x33b   : > { %v1328_v33 = vmul.f32 0.0, %v2403_v30 }
 0x3af   : > { %v1331_v20 = vpop.xlane.xlu0 %1330 }
 0x3b0   : > { %v1341_v25 = vadd.f32 %v1331_v20, %v1325_v22 }
 0x3b2   : > { %2404 = vrcp.f32 %v1341_v25 }
 0x3b3   : > { %v1334_v24 = vpop.xlane.xlu0 %1333 }
 0x3b4   : > { %v1342_v26 = vadd.f32 %v1334_v24, %v1326_v15  ;;  %v2320_v24 = vpack.c.bf16 %v1817_v19, %v1816_v18 }
 0x3b6   : > { %2406 = vrcp.f32 %v1342_v26  ;;  %2321 = vmatpush3.bf16.msra.mxu0 %v2320_v24 }
 0x3b7   : > { %v1337_v27 = vpop.xlane.xlu0 %1336 }
 0x3b8   : > { %v1343_v31 = vadd.f32 %v1337_v27, %v1327_v28 }
 0x3ba   : > { %2408 = vrcp.f32 %v1343_v31 }
 0x3bb   : > { %v1340_v32 = vpop.xlane.xlu1 %1339 }
 0x3bc   : > { %v1344_v34 = vadd.f32 %v1340_v32, %v1328_v33  ;;  %v2405_v36 = vpop.eup %2404 }
 0x3bd   : > { %v1645_v37 = vmul.f32 %v2405_v36, %v1341_v25 }
 0x3be   : > { %2410 = vrcp.f32 %v1344_v34 }
 0x3bf   : > { %v1649_v39 = vsub.f32 2.0, %v1645_v37 }
 0x3c0   : > { %v2407_v38 = vpop.eup %2406 }
 0x3c1   : > { %v1646_v40 = vmul.f32 %v2407_v38, %v1342_v26  ;;  %v1653_v46 = vmul.f32 %v2405_v36, %v1649_v39 }
 0x3c3   : > { %v1650_v43 = vsub.f32 2.0, %v1646_v40 }
 0x3c4   : > { %v2409_v41 = vpop.eup %2408 }
 0x3c5   : > { %v1647_v44 = vmul.f32 %v2409_v41, %v1343_v31  ;;  %v1654_v54 = vmul.f32 %v2407_v38, %v1650_v43 }
 0x3c7   : > { %v1651_v51 = vsub.f32 2.0, %v1647_v44 }
 0x3c8   : > { %v2411_v48 = vpop.eup %2410 }
 0x3c9   : > { %v1648_v52 = vmul.f32 %v2411_v48, %v1344_v34  ;;  %v1655_v60 = vmul.f32 %v2409_v41, %v1651_v51 }
 0x3cb   : > { %v1652_v58 = vsub.f32 2.0, %v1648_v52 }
 0x3cd   : > { %v1656_v4 = vmul.f32 %v2411_v48, %v1652_v58 }
 0x3f4   : > { %v1414_v42 = vpop.f32.mrb[10].mxu1 }
 0x3f5   : > { %v1637_v45 = vadd.f32 %v1414_v42, %v1325_v22  ;;  %v2217_v47 = vpop.f32.mrb[11].mxu1 }
 0x3f7   : > { %v1657_v49 = vmul.f32 %v1653_v46, %v1637_v45 }
 0x3f8   : > { %v1487_v50 = vpop.f32.mrb[12].mxu1 }
 0x3f9   : > { %v1638_v53 = vadd.f32 %v1487_v50, %v1326_v15  ;;  %v2222_v55 = vpop.f32.mrb[13].mxu1 }
 0x3fb   : > { %v1658_v56 = vmul.f32 %v1654_v54, %v1638_v53 }
 0x3fc   : > { %v1560_v57 = vpop.f32.mrb[14].mxu1 }
 0x3fd   : > { %v1639_v59 = vadd.f32 %v1560_v57, %v1327_v28  ;;  %v2227_v61 = vpop.f32.mrb[15].mxu1 }
 0x3ff   : > { %v1659_v62 = vmul.f32 %v1655_v60, %v1639_v59 }
 0x400   : > { %v1633_v63 = vpop.f32.mrb[16].mxu1 }
 0x401   : > { %v1661_v0 = vcombine.low %v1657_v49, %v1659_v62  ;;  %v1662_v1 = vcombine.high %v1657_v49, %v1659_v62  ;;  %v1640_v2 = vadd.f32 %v1633_v63, %v1328_v33  ;;  %v2232_v5 = vpop.f32.mrb[17].mxu1  ;;  %v2010_v49 = vld [vmem:[%s2984_s5] ss:$0 sm:$0xff] }
 0x403   : > { %v1660_v17 = vmul.f32 %v1656_v4, %v1640_v2  ;;  %v1669_v9 = vrot.slane %v1661_v0, %v2789_v29  ;;  %v1676_v10 = vrot.slane %v1662_v1, %v2789_v29 }
 0x405   : > { %v1677_v7 = vcombine.low %v1658_v56, %v1660_v17  ;;  %v1678_v8 = vcombine.high %v1658_v56, %v1660_v17 }
 0x407   : > { %v1685_v11 = vrot.slane %v1677_v7, %v2789_v29  ;;  %v1692_v6 = vrot.slane %v1678_v8, %v2789_v29 }
 0x409   : > { %v1693_v12 = vcombine.low %v1669_v9, %v1685_v11  ;;  %v1694_v13 = vcombine.high %v1669_v9, %v1685_v11  ;;  %v1709_v14 = vcombine.low %v1676_v10, %v1692_v6  ;;  %v1710_v16 = vcombine.high %v1676_v10, %v1692_v6 }
 0x40b   : > { %v1701_v20 = vrot.slane %v1693_v12, %v2791_v35  ;;  %v1708_v21 = vrot.slane %v1694_v13, %v2791_v35  ;;  %v1717_v22 = vrot.slane %v1709_v14, %v2791_v35  ;;  %v1724_v23 = vrot.slane %v1710_v16, %v2791_v35 }
 0x40d   : > { %v1729_v25 = vcombine.low %v1701_v20, %v1708_v21  ;;  %v2008_v15 = vcombine.high %v1701_v20, %v1708_v21  ;;  %v1745_v3 = vcombine.low %v1717_v22, %v1724_v23  ;;  %v2009_v26 = vcombine.high %v1717_v22, %v1724_v23 }
 0x40f   : > { %v1736_v27 = vrot.slane %v1729_v25, %v2789_v29  ;;  %v1744_v28 = vrot.slane %v2008_v15, %v2789_v29  ;;  %v1752_v30 = vrot.slane %v1745_v3, %v2789_v29  ;;  %v1760_v31 = vrot.slane %v2009_v26, %v2789_v29 }
 0x411   : > { %v1762_v32 = vcombine.high %v1736_v27, %v1744_v28  ;;  %v1778_v33 = vcombine.high %v1752_v30, %v1760_v31  ;;  %v1761_v34 = vcombine.low %v1736_v27, %v1744_v28  ;;  %v1777_v36 = vcombine.low %v1752_v30, %v1760_v31 }
 0x413   : > { %v1776_v37 = vrot.slane %v1762_v32, %v2791_v35  ;;  %v1792_v38 = vrot.slane %v1778_v33, %v2791_v35  ;;  %v1769_v39 = vrot.slane %v1761_v34, %v2791_v35  ;;  %v1785_v40 = vrot.slane %v1777_v36, %v2791_v35 }
 0x415   : > { %v1795_v41 = vcombine.low %v1776_v37, %v1792_v38  ;;  %v1794_v42 = vcombine.high %v1769_v39, %v1785_v40  ;;  %v1796_v43 = vcombine.high %v1776_v37, %v1792_v38  ;;  %v1793_v44 = vcombine.low %v1769_v39, %v1785_v40 }
 0x417   : > { %1802 = vrot.lane.b32.xlu1 %v1795_v41, %s2500_s11  ;;  %1798 = vrot.lane.b32.xlu0 %v1794_v42, %s2501_s12  ;;  %s2412_s11 = scalar_lea.vmem %s2934_s20, 128  ;;  %s2416_s12 = sshll.u32 %s2503_s24, 4  ;;  %s2417_s12 = int_to_ptr.vmem [resolvable:$false] %s2416_s12 }
 0x418   : > { %p2413_p12 = scmp.ne.s32.totalorder %s2934_s20, %s2412_s11  ;;  %p2419_p1 = scmp.lt.s32.totalorder %s2934_s20, %s2417_s12 }
 0x41a   : > { %p2414_p13 = pnand %p2413_p12, %p2579_p4 }
 0x41b   : > { %1806 = vrot.lane.b32.xlu1 %v1796_v43, %s2502_s14  ;;  %s2418_s14 = scalar_lea.vmem %s2417_s12, 256 }
 0x41c   : > { %p2415_p0 = pneg %p2414_p13  ;;  %p2420_p2 = scmp.lt.s32.totalorder %s2418_s14, %s2412_s11 }
 0x41e   : > { %p2421_p3 = por %p2420_p2, %p2419_p1 }
 0x420   : > { %p2422_p5 = pnand %p2421_p3, %p2415_p0 }
 0x489   : > { %v1803_v29 = vpop.permute.xlu1 %1802  ;;  %v1799_v45 = vpop.permute.xlu0 %1798 }
 0x48a   : > { %v1809_v46 = vsel %vm584_vm1, %v1793_v44, %v1799_v45 }
 0x48b   : > { %v1811_v47 = vsel %vm1810_vm2, %v1809_v46, %v1803_v29 }
 0x48d   : > { %v1807_v35 = vpop.permute.xlu1 %1806 }
 0x48e   : > { %v1813_v48 = vsel %vm1812_vm3, %v1811_v47, %v1807_v35 }
 0x48f   : > { %2242 = vmatmul.mubr.msk.f32.vlgmr.msra.gmra.mrb[4].mxu0 %vm1825_vm4, %v1813_v48 }
 0x562   : > { %v1895_v50 = vpop.f32.mrb[4].mxu0 }
 0x563   : > { %v1896_v51 = vadd.f32 %v2010_v49, %v1895_v50  ;;  %v2243_v52 = vpop.f32.mrb[5].mxu0 }
 0x565   : > { %1899 = vst [vmem:[%s256_s19] sm:$0xff] %v1896_v51 }
 0x566   : > { %2425 = shalt.err (!%p2422_p5)
}
 0x567   : > { %s2426_s15 = scalar_lea.hbm %s2932_s30, 128  ;;  %s2430_s17 = scalar_lea.hbm %s2985_s6, 256 }
 0x568   : > { %p2427_p6 = scmp.ne.s32.totalorder %s2932_s30, %s2426_s15  ;;  %p2431_p10 = scmp.lt.u32.totalorder %s2932_s30, %s2985_s6 }
 0x569   : > { %p2432_p11 = scmp.lt.u32.totalorder %s2430_s17, %s2426_s15  ;;  %p2434_p13 = scmp.lt.u32.totalorder %s2426_s15, %s2932_s30 }
 0x56a   : > { %p2428_p7 = pnand %p2427_p6, %p2579_p4 }
 0x56b   : > { %p2433_p12 = por %p2432_p11, %p2431_p10 }
 0x56c   : > { %p2429_p9 = pneg %p2428_p7 }
 0x56d   : > { %p2435_p0 = por %p2434_p13, %p2433_p12 }
 0x56f   : > { %p2436_p1 = pnand %p2435_p0, %p2429_p9 }
 0x571   : > { %2439 = shalt.err (!%p2436_p1)
}
 0x572   : > { %2322 = dma.vmem_to_hbm [thread:$0]  (%p2579_p4), %s2934_s20, 128, %s2932_s30, %s1901_s8  }
 0x573 PF: > { %p2328_p2 = scmp.ge.s32.totalorder %s2490_s26, 2  ;;  %s1927_s27 = sand.u32 1, %s2470_s21  }
 0x574   : > { %s1928_s28 = scalar_lea.sflag [#allocation5], %s1927_s27 }
 0x575   : > { %p2325_p3 = pnand %p2328_p2, %p2586_p8 }
 0x577   : > { %2465 = dma.done.wait (!%p2325_p3), %s1928_s28, 128  }
 0x578   : > { %2467 = vsyncadd (!%p2325_p3), %s1928_s28, 4294967168  ;;  %s19_s26 = sadd.s32 1, %s2490_s26   ;;  %s2988_s21 = smov %s2474_s22 }
 0x579   : > { %p16_p5 = scmp.ge.s32.totalorder %s19_s26, 4   ;;  %s2989_s22 = smov %s2478_s23 }
 0x57a   : > { %s2990_s23 = smov %s2592_s10  ;;  %s2991_s24 = smov %s2486_s25 }
 0x57b   : > { %s2992_s25 = smov %s2994_s29  ;;  %18 = sbr.rel (!%p16_p5) target bundleno = 4 (0x4), region = 83 }
 0x582   :  { %1933 = vsyncpa [#allocation5], 1 }
 0x583   :  { %1935 = vsyncpa [#allocation5 + $0x1], 1 }

// kernel: tpu_custom_call.1
= control target key start
LH: loop header
LB: loop body
LE: loop exit
PB: predicated region body
PF: predicated region fallthrough
CT: control target
= control target key end

     0   :  { %11 = vsyncpa [#allocation5], 0  ;;  %s2979_s0 = inlined_call_operand.vmem [shape: f32[2,8,128], index: 0, kind: input, shape index: {}]   ;;  %s2980_s1 = inlined_call_operand.vmem [shape: f32[128,32], index: 1, kind: input, shape index: {}]   ;;  %s2981_s2 = inlined_call_operand.vmem [shape: f32[128,32], index: 2, kind: input, shape index: {}]   ;;  %s2982_s3 = inlined_call_operand.vmem [shape: f32[128,32], index: 3, kind: input, shape index: {}]   ;;  %s2983_s4 = inlined_call_operand.vmem [shape: f32[32,128], index: 4, kind: input, shape index: {}]   ;;  %s2984_s5 = inlined_call_operand.vmem [shape: f32[1,128], index: 5, kind: input, shape index: {}]   ;;  %s2985_s6 = inlined_call_operand.hbm [shape: f32[2,8,128], index: 6, kind: output, shape index: {}]  }
   0x1   :  { %13 = vsyncpa [#allocation5 + $0x1], 0  ;;  %s2539_s21 = smov 0   ;;  %s2541_s22 = smov 0  }
   0x2   :  { %s2543_s23 = smov 0   ;;  %s2545_s24 = smov 0  }
   0x3   :  { %s2547_s25 = smov 0   ;;  %s2549_s26 = smov 0  }
   0x4 LB: > { %s1983_s27 = sadd.s32 4294967295, %s2490_s26   ;;  %s1984_s28 = sadd.s32 4294967294, %s2490_s26   ;;  %s2490_s26 = sphi %s2549_s26, %s19_s26   ;;  %s2486_s25 = sphi %s2547_s25, %s2992_s25   ;;  %s2482_s24 = sphi %s2545_s24, %s2991_s24   ;;  %s2478_s23 = sphi %s2543_s23, %s2990_s23   ;;  %s2474_s22 = sphi %s2541_s22, %s2989_s22   ;;  %s2470_s21 = sphi %s2539_s21, %s2988_s21  }
   0x5   : > { %s31_s29 = sadd.s32 1, %s2486_s25  ;;  %s171_s30 = sadd.s32 1, %s2478_s23 }
   0x6   : > { %p33_p0 = scmp.ge.s32.totalorder %s31_s29, 2  ;;  %p181_p1 = scmp.ne.s32.totalorder %s2478_s23, %s2474_s22 }
   0x7   : > { %p182_p2 = scmp.eq.s32.totalorder %s1983_s27, 1  ;;  %p187_p3 = scmp.ne.s32.totalorder %s2474_s22, %s2470_s21 }
   0x8   : > { %s2994_s29 = smov (%p33_p0, %s31_s29), 0  ;;  %p188_p5 = scmp.eq.s32.totalorder %s1984_s28, 1 }
   0x9   : > { %p2579_p4 = por %p182_p2, %p181_p1  ;;  %s166_s8 = ssub.s32 %s2486_s25, %s2994_s29 }
   0xa   : > { %p1987_p6 = scmp.ge.s32.totalorder %s2490_s26, 1  ;;  %p169_p7 = scmp.eq.s32.totalorder %s166_s8, 0 }
   0xb   : > { %p2586_p8 = por %p188_p5, %p187_p3  ;;  %p228_p9 = scmp.lt.s32.totalorder %s2490_s26, 3 }
   0xc   : > { %s2592_s10 = scalar_select %p169_p7, %s2478_s23, %s171_s30  }
   0xd   : > { %p229_p10 = pnand %p1987_p6, %p228_p9 }
   0xe   : > { %v266_v0 = vld [vmem:[%s2981_s2] sm:$0xff] (!%p229_p10)  ;;  %v267_v1 = vld [vmem:[%s2981_s2 + $0x8] sm:$0xff] (!%p229_p10)  ;;  %v268_v2 = vld [vmem:[%s2981_s2 + $0x10] sm:$0xff] (!%p229_p10)  ;;  %v2492_v3 = vmov (!%p229_p10), 0.0|0.0   ;;  %vm2493_vm0 = vmmov (!%p229_p10), 0   ;;  %v2494_v6 = vmov (!%p229_p10), 0.0  }
   0xf   : > { %232 = sbr.rel (%p229_p10) target bundleno = 1395 (0x573), region = 44  ;;  %2244 = vmatprep.subr.bf16.mxu0 (!%p229_p10), %v2492_v3  ;;  %v2245_v4 = vpack.c.bf16 (!%p229_p10), %v267_v1, %v266_v0  ;;  %v269_v5 = vld [vmem:[%s2981_s2 + $0x18] sm:$0xff] (!%p229_p10)  ;;  %2120 = vmatprep.mubr.msk.f32.mxu0 (!%p229_p10), %vm2493_vm0, %v2494_v6  ;;  %v270_v8 = vld [vmem:[%s2981_s2 + $0x20] sm:$0xff] (!%p229_p10)  ;;  %v271_v9 = vld [vmem:[%s2981_s2 + $0x28] sm:$0xff] (!%p229_p10)  ;;  %p257_p11 = scmp.lt.s32.totalorder (!%p229_p10), %s2482_s24, 1  ;;  %vm584_vm1 = vcmask (!%p229_p10), 64512  }
  0x10   : > { %2268 = vmatprep.subr.bf16.mxu1 (!%p229_p10), %v2492_v3  ;;  %2155 = vmatprep.mubr.msk.f32.mxu1 (!%p229_p10), %vm2493_vm0, %v2494_v6  ;;  %v2248_v7 = vpack.c.bf16 (!%p229_p10), %v269_v5, %v268_v2  ;;  %v2251_v10 = vpack.c.bf16 (!%p229_p10), %v271_v9, %v270_v8  ;;  %v272_v11 = vld [vmem:[%s2981_s2 + $0x30] sm:$0xff] (!%p229_p10)  ;;  %v273_v12 = vld [vmem:[%s2981_s2 + $0x38] sm:$0xff] (!%p229_p10)  ;;  %v352_v14 = vld [vmem:[%s2982_s3] sm:$0xff] (!%p229_p10)  ;;  %s2495_s15 = smov (!%p229_p10), 120   ;;  %s2497_s16 = smov (!%p229_p10), 112   ;;  %vm1810_vm2 = vcmask (!%p229_p10), 130048  }
  0x11   : > { %2246 = vmatpush3.bf16.msra.mxu0 (!%p229_p10), %v2245_v4  ;;  %v2254_v13 = vpack.c.bf16 (!%p229_p10), %v273_v12, %v272_v11  ;;  %v353_v15 = vld [vmem:[%s2982_s3 + $0x8] sm:$0xff] (!%p229_p10)  ;;  %v354_v16 = vld [vmem:[%s2982_s3 + $0x10] sm:$0xff] (!%p229_p10)  ;;  %v274_v17 = vld [vmem:[%s2981_s2 + $0x40] sm:$0xff] (!%p229_p10)  ;;  %s2500_s11 = smov (!%p229_p10), 16   ;;  %s2501_s12 = smov (!%p229_p10), 8   ;;  %vm1812_vm3 = vcmask (!%p229_p10), 195584  }
  0x12   : > { %2247 = vmatprep.subr.bf16.mxu0 (!%p229_p10), %v2492_v3  ;;  %v275_v18 = vld [vmem:[%s2981_s2 + $0x48] sm:$0xff] (!%p229_p10)  ;;  %v2269_v19 = vpack.c.bf16 (!%p229_p10), %v353_v15, %v352_v14  ;;  %v355_v20 = vld [vmem:[%s2982_s3 + $0x18] sm:$0xff] (!%p229_p10)  ;;  %v356_v23 = vld [vmem:[%s2982_s3 + $0x20] sm:$0xff] (!%p229_p10)  ;;  %s2502_s14 = smov (!%p229_p10), 24   ;;  %vm1825_vm4 = vcmask (!%p229_p10), 261120   ;;  %s2013_s18 = sshll.u32 (!%p229_p10), %s2482_s24, 7 }
  0x13   : > { %v2272_v21 = vpack.c.bf16 (!%p229_p10), %v355_v20, %v354_v16  ;;  %v2257_v22 = vpack.c.bf16 (!%p229_p10), %v275_v18, %v274_v17  ;;  %v357_v24 = vld [vmem:[%s2982_s3 + $0x28] sm:$0xff] (!%p229_p10)  ;;  %v276_v25 = vld [vmem:[%s2981_s2 + $0x50] sm:$0xff] (!%p229_p10)  ;;  %v277_v26 = vld [vmem:[%s2981_s2 + $0x58] sm:$0xff] (!%p229_p10)  ;;  %s2932_s30 = scalar_lea.hbm (!%p229_p10), %s2985_s6, %s2013_s18 }
  0x14   : > { %2270 = vmatpush3.bf16.msra.mxu1 (!%p229_p10), %v2269_v19  ;;  %v2275_v27 = vpack.c.bf16 (!%p229_p10), %v357_v24, %v356_v23  ;;  %v2260_v28 = vpack.c.bf16 (!%p229_p10), %v277_v26, %v276_v25  ;;  %v358_v29 = vld [vmem:[%s2982_s3 + $0x30] sm:$0xff] (!%p229_p10)  ;;  %v359_v30 = vld [vmem:[%s2982_s3 + $0x38] sm:$0xff] (!%p229_p10)  ;;  %v278_v31 = vld [vmem:[%s2981_s2 + $0x60] sm:$0xff] (!%p229_p10)  ;;  %v2498_v19 = vmov (!%p229_p10), 1983009808  }
  0x15   : > { %2249 = vmatpush3.bf16.msra.mxu0 (!%p229_p10), %v2248_v7  ;;  %2271 = vmatprep.subr.bf16.mxu1 (!%p229_p10), %v2492_v3  ;;  %v279_v32 = vld [vmem:[%s2981_s2 + $0x68] sm:$0xff] (!%p229_p10)  ;;  %v2278_v33 = vpack.c.bf16 (!%p229_p10), %v359_v30, %v358_v29  ;;  %v360_v35 = vld [vmem:[%s2982_s3 + $0x40] sm:$0xff] (!%p229_p10)  ;;  %v280_v37 = vld [vmem:[%s2981_s2 + $0x70] sm:$0xff] (!%p229_p10)  ;;  %v451_v20 = vunpack.c.l.s4 (!%p229_p10), %v2498_v19 }
  0x16   : > { %2250 = vmatprep.subr.bf16.mxu0 %v2492_v3  ;;  %s258_s13 = scalar_select %p257_p11, %s2482_s24, 1  ;;  %v2263_v34 = vpack.c.bf16 %v279_v32, %v278_v31  ;;  %v361_v36 = vld [vmem:[%s2982_s3 + $0x48] sm:$0xff]  ;;  %v281_v38 = vld [vmem:[%s2981_s2 + $0x78] sm:$0xff]  ;;  %v362_v41 = vld [vmem:[%s2982_s3 + $0x50] sm:$0xff] }
  0x17   : > { %v2281_v39 = vpack.c.bf16 %v361_v36, %v360_v35  ;;  %v2266_v40 = vpack.c.bf16 %v281_v38, %v280_v37  ;;  %v363_v42 = vld [vmem:[%s2982_s3 + $0x58] sm:$0xff]  ;;  %v740_v43 = vld [vmem:[%s2980_s1] sm:$0xff]  ;;  %v741_v44 = vld [vmem:[%s2980_s1 + $0x8] sm:$0xff]  ;;  %v452_v24 = vunpack.c.0.s8 %v451_v20  ;;  %s2503_s24 = smov [#allocation4]  }
  0x18   : > { %2273 = vmatpush3.bf16.msra.mxu1 %v2272_v21  ;;  %s1989_s28 = sshll.u32 %s258_s13, 3  ;;  %v2284_v45 = vpack.c.bf16 %v363_v42, %v362_v41  ;;  %v2293_v47 = vpack.c.bf16 %v741_v44, %v740_v43  ;;  %v742_v48 = vld [vmem:[%s2980_s1 + $0x10] sm:$0xff]  ;;  %v743_v49 = vld [vmem:[%s2980_s1 + $0x18] sm:$0xff]  ;;  %v744_v51 = vld [vmem:[%s2980_s1 + $0x20] sm:$0xff]  ;;  %v453_v21 = vlaneseq }
  0x19   : > { %2252 = vmatpush3.bf16.msra.mxu0 %v2251_v10  ;;  %2274 = vmatprep.subr.bf16.mxu1 %v2492_v3  ;;  %s260_s13 = scalar_lea.vmem %s2979_s0, %s1989_s28  ;;  %v2296_v50 = vpack.c.bf16 %v743_v49, %v742_v48  ;;  %v745_v52 = vld [vmem:[%s2980_s1 + $0x28] sm:$0xff]  ;;  %v746_v54 = vld [vmem:[%s2980_s1 + $0x30] sm:$0xff]  ;;  %v747_v55 = vld [vmem:[%s2980_s1 + $0x38] sm:$0xff] }
  0x1a   : > { %2253 = vmatprep.subr.bf16.mxu0 %v2492_v3  ;;  %v265_v46 = vld [vmem:[%s260_s13] sm:$0xff]  ;;  %v2299_v53 = vpack.c.bf16 %v745_v52, %v744_v51  ;;  %v2302_v56 = vpack.c.bf16 %v747_v55, %v746_v54  ;;  %v749_v58 = vld [vmem:[%s2980_s1 + $0x48] sm:$0xff]  ;;  %v750_v60 = vld [vmem:[%s2980_s1 + $0x50] sm:$0xff]  ;;  %s2496_s13 = smov 104   ;;  %v454_v25 = vshrl.u32 %v453_v21, 7 }
  0x1b   : > { %v748_v57 = vld [vmem:[%s2980_s1 + $0x40] sm:$0xff]  ;;  %v751_v61 = vld [vmem:[%s2980_s1 + $0x58] sm:$0xff]  ;;  %v753_v0 = vld [vmem:[%s2980_s1 + $0x68] sm:$0xff] }
  0x1c   : > { %2276 = vmatpush3.bf16.msra.mxu1 %v2275_v27  ;;  %v2305_v59 = vpack.c.bf16 %v749_v58, %v748_v57  ;;  %v2308_v62 = vpack.c.bf16 %v751_v61, %v750_v60  ;;  %v752_v63 = vld [vmem:[%s2980_s1 + $0x60] sm:$0xff]  ;;  %v754_v2 = vld [vmem:[%s2980_s1 + $0x70] sm:$0xff]  ;;  %v755_v4 = vld [vmem:[%s2980_s1 + $0x78] sm:$0xff]  ;;  %v2789_v29 = vsub.s32 %v452_v24, %v454_v25 }
  0x1d   : > { %2255 = vmatpush3.bf16.msra.mxu0 %v2254_v13  ;;  %2277 = vmatprep.subr.bf16.mxu1 %v2492_v3  ;;  %v2311_v1 = vpack.c.bf16 %v753_v0, %v752_v63  ;;  %v2314_v5 = vpack.c.bf16 %v755_v4, %v754_v2  ;;  %v364_v7 = vld [vmem:[%s2982_s3 + $0x60] sm:$0xff]  ;;  %v365_v8 = vld [vmem:[%s2982_s3 + $0x68] sm:$0xff]  ;;  %v366_v10 = vld [vmem:[%s2982_s3 + $0x70] sm:$0xff] }
  0x1e   : > { %2256 = vmatprep.subr.bf16.mxu0 %v2492_v3  ;;  %v2287_v9 = vpack.c.bf16 %v365_v8, %v364_v7  ;;  %v367_v11 = vld [vmem:[%s2982_s3 + $0x78] sm:$0xff] }
  0x1f   : > { %v2290_v12 = vpack.c.bf16 %v367_v11, %v366_v10 }
  0x20   : > { %2279 = vmatpush3.bf16.msra.mxu1 %v2278_v33 }
  0x21   : > { %2258 = vmatpush3.bf16.msra.mxu0 %v2257_v22  ;;  %2280 = vmatprep.subr.bf16.mxu1 %v2492_v3  ;;  %v2499_v22 = vmov 1934713408  }
  0x22   : > { %2259 = vmatprep.subr.bf16.mxu0 %v2492_v3  ;;  %v483_v23 = vunpack.c.l.s4 %v2499_v22 }
  0x24   : > { %2282 = vmatpush3.bf16.msra.mxu1 %v2281_v39 }
  0x25   : > { %2261 = vmatpush3.bf16.msra.mxu0 %v2260_v28  ;;  %2283 = vmatprep.subr.bf16.mxu1 %v2492_v3  ;;  %v484_v28 = vunpack.c.0.s8 %v483_v23 }
  0x26   : > { %2262 = vmatprep.subr.bf16.mxu0 %v2492_v3 }
  0x27   : > { %v2791_v35 = vsub.s32 %v484_v28, %v454_v25 }
  0x28   : > { %2285 = vmatpush3.bf16.msra.mxu1 %v2284_v45 }
  0x29   : > { %2264 = vmatpush3.bf16.msra.mxu0 %v2263_v34  ;;  %2286 = vmatprep.subr.bf16.mxu1 %v2492_v3 }
  0x2a   : > { %2265 = vmatprep.subr.bf16.mxu0 %v2492_v3 }
  0x2c   : > { %2288 = vmatpush3.bf16.msra.mxu1 %v2287_v9 }
  0x2d   : > { %2267 = vmatpush3.bf16.msra.mxu0 %v2266_v40  ;;  %2289 = vmatprep.subr.bf16.mxu1 %v2492_v3 }
  0x2e   : > { %2292 = vmatprep.subr.bf16.mxu0 %v2492_v3 }
  0x30   : > { %2121 = vmatmul.mubr.f32.vlgmr.msra.gmra.mrb[0].mxu0 %v265_v46  ;;  %2291 = vmatpush3.bf16.msra.mxu1 %v2290_v12 }
  0x31   : > { %2294 = vmatpush3.bf16.msra.mxu0 %v2293_v47  ;;  %2190 = vmatprep.mubr.msk.f32.mxu0 %vm2493_vm0, %v2494_v6 }
  0x32   : > { %2295 = vmatprep.subr.bf16.mxu0 %v2492_v3  ;;  %2193 = vmatprep.subr.mxu1 %v2494_v6 }
  0x33   : > { %2156 = vmatmul.mubr.f32.vlgmr.msra.gmra.mrb[0].mxu1 %v265_v46 }
  0x34   : > { %2195 = vmatprep.mubr.msk.f32.mxu1 %vm2493_vm0, %v2494_v6 }
  0x35   : > { %2297 = vmatpush3.bf16.msra.mxu0 %v2296_v50 }
  0x36   : > { %2298 = vmatprep.subr.bf16.mxu0 %v2492_v3 }
  0x39   : > { %2300 = vmatpush3.bf16.msra.mxu0 %v2299_v53 }
  0x3a   : > { %2301 = vmatprep.subr.bf16.mxu0 %v2492_v3 }
  0x3d   : > { %2303 = vmatpush3.bf16.msra.mxu0 %v2302_v56 }
  0x3e   : > { %2304 = vmatprep.subr.bf16.mxu0 %v2492_v3 }
  0x41   : > { %2306 = vmatpush3.bf16.msra.mxu0 %v2305_v59 }
  0x42   : > { %2307 = vmatprep.subr.bf16.mxu0 %v2492_v3 }
  0x45   : > { %2309 = vmatpush3.bf16.msra.mxu0 %v2308_v62 }
  0x46   : > { %2310 = vmatprep.subr.bf16.mxu0 %v2492_v3 }
  0x49   : > { %2312 = vmatpush3.bf16.msra.mxu0 %v2311_v1 }
  0x4a   : > { %2313 = vmatprep.subr.bf16.mxu0 %v2492_v3 }
  0x4d   : > { %2315 = vmatpush3.bf16.msra.mxu0 %v2314_v5 }
  0x4e   : > { %2316 = vmatprep.subr.bf16.mxu0 %v2492_v3 }
  0x50   : > { %2191 = vmatmul.mubr.f32.vlgmr.msra.gmra.mrb[2].mxu0 %v265_v46 }
  0x51   : > { %2241 = vmatprep.mubr.msk.f32.mxu0 %vm2493_vm0, %v2494_v6 }
 0x103   : > { %v348_v13 = vpop.f32.mrb[0].mxu0 }
 0x104   : > { %439 = vrot.lane.b32.xlu0 %v348_v13, %s2495_s15  ;;  %v2122_v14 = vpop.f32.mrb[1].mxu0  ;;  %445 = vrot.lane.b32.xlu1 %v348_v13, %s2496_s13 }
 0x106   : > { %v2784_v17 = vpop.f32.mrb[0].mxu1 }
 0x107   : > { %v2157_v18 = vpop.f32.mrb[1].mxu1 }
 0x108   : > { %442 = vrot.lane.b32.xlu0 %v348_v13, %s2497_s16 }
 0x123   : > { %v2779_v15 = vpop.f32.mrb[2].mxu0 }
 0x124   : > { %830 = vrot.lane.b32.xlu0 %v2779_v15, %s2497_s16  ;;  %827 = vrot.lane.b32.xlu1 %v2779_v15, %s2495_s15  ;;  %v2192_v16 = vpop.f32.mrb[3].mxu0 }
 0x128   : > { %833 = vrot.lane.b32.xlu1 %v2779_v15, %s2496_s13 }
 0x12c   : > { %590 = vrot.lane.b32.xlu1 %v2784_v17, %s2495_s15  ;;  %s254_s15 = sand.u32 1, %s2474_s22  }
 0x12d   : > { %s1901_s8 = scalar_lea.sflag [#allocation5], %s254_s15 }
 0x130   : > { %593 = vrot.lane.b32.xlu1 %v2784_v17, %s2497_s16 }
 0x134   : > { %596 = vrot.lane.b32.xlu1 %v2784_v17, %s2496_s13  ;;  %s1988_s13 = sshll.u32 %s254_s15, 3 }
 0x135   : > { %s256_s19 = scalar_lea.vmem [#allocation4], %s1988_s13 }
 0x136   : > { %s1915_s20 = sshll.u32 %s256_s19, 4  ;;  %s2934_s20 = int_to_ptr.vmem [resolvable:$true] %s1915_s20 }
 0x176   : > { %v440_v26 = vpop.permute.xlu0 %439  ;;  %v446_v27 = vpop.permute.xlu1 %445 }
 0x177   : > { %v464_v30 = vcombine.low %v440_v26, %v446_v27  ;;  %v465_v31 = vcombine.high %v440_v26, %v446_v27 }
 0x179   : > { %v472_v36 = vrot.slane %v464_v30, %v2789_v29  ;;  %v479_v37 = vrot.slane %v465_v31, %v2789_v29 }
 0x17a   : > { %v443_v32 = vpop.permute.xlu0 %442 }
 0x17b   : > { %v448_v33 = vcombine.low %v348_v13, %v443_v32  ;;  %v449_v34 = vcombine.high %v348_v13, %v443_v32 }
 0x17d   : > { %v456_v38 = vrot.slane %v448_v33, %v2789_v29  ;;  %v463_v39 = vrot.slane %v449_v34, %v2789_v29 }
 0x17f   : > { %v480_v40 = vcombine.low %v456_v38, %v472_v36  ;;  %v481_v41 = vcombine.high %v456_v38, %v472_v36  ;;  %v496_v42 = vcombine.low %v463_v39, %v479_v37  ;;  %v497_v43 = vcombine.high %v463_v39, %v479_v37 }
 0x181   : > { %v488_v44 = vrot.slane %v480_v40, %v2791_v35  ;;  %v495_v45 = vrot.slane %v481_v41, %v2791_v35  ;;  %v504_v46 = vrot.slane %v496_v42, %v2791_v35  ;;  %v511_v47 = vrot.slane %v497_v43, %v2791_v35 }
 0x183   : > { %v516_v48 = vcombine.low %v488_v44, %v495_v45  ;;  %v1990_v49 = vcombine.high %v488_v44, %v495_v45  ;;  %v532_v50 = vcombine.low %v504_v46, %v511_v47  ;;  %v1991_v51 = vcombine.high %v504_v46, %v511_v47 }
 0x185   : > { %v523_v52 = vrot.slane %v516_v48, %v2789_v29  ;;  %v531_v53 = vrot.slane %v1990_v49, %v2789_v29  ;;  %v539_v54 = vrot.slane %v532_v50, %v2789_v29  ;;  %v547_v55 = vrot.slane %v1991_v51, %v2789_v29 }
 0x187   : > { %v548_v56 = vcombine.low %v523_v52, %v531_v53  ;;  %v549_v57 = vcombine.high %v523_v52, %v531_v53  ;;  %v564_v58 = vcombine.low %v539_v54, %v547_v55  ;;  %v565_v59 = vcombine.high %v539_v54, %v547_v55 }
 0x189   : > { %v556_v60 = vrot.slane %v548_v56, %v2791_v35  ;;  %v563_v61 = vrot.slane %v549_v57, %v2791_v35  ;;  %v572_v62 = vrot.slane %v564_v58, %v2791_v35  ;;  %v579_v63 = vrot.slane %v565_v59, %v2791_v35 }
 0x18b   : > { %v580_v0 = vcombine.low %v556_v60, %v572_v62  ;;  %v581_v1 = vcombine.high %v556_v60, %v572_v62  ;;  %v582_v2 = vcombine.low %v563_v61, %v579_v63  ;;  %v583_v4 = vcombine.high %v563_v61, %v579_v63 }
 0x18d   : > { %585 = vst.msk [vmem:[#allocation2] sm:$0xff] %vm584_vm1, %v580_v0  ;;  %586 = vst.msk [vmem:[#allocation2 + $0x8] sm:$0xff] %vm584_vm1, %v581_v1 }
 0x18e   : > { %587 = vst.msk [vmem:[#allocation2 + $0x10] sm:$0xff] %vm584_vm1, %v582_v2  ;;  %588 = vst.msk [vmem:[#allocation2 + $0x18] sm:$0xff] %vm584_vm1, %v583_v4 }
 0x194   : > { %v972_v5 = vld [vmem:[#allocation2] sm:$0xff]  ;;  %v973_v44 = vld [vmem:[#allocation2 + $0x8] sm:$0xff] }
 0x195   : > { %2194 = vmatpush3.xpose.msk.msra.mxu1 %vm584_vm1, %v972_v5  ;;  %v974_v48 = vld [vmem:[#allocation2 + $0x10] sm:$0xff]  ;;  %v975_v50 = vld [vmem:[#allocation2 + $0x18] sm:$0xff] }
 0x196   : > { %v831_v7 = vpop.permute.xlu0 %830  ;;  %v828_v8 = vpop.permute.xlu1 %827  ;;  %2198 = vmatprep.subr.mxu1 %v2494_v6 }
 0x197   : > { %v836_v9 = vcombine.low %v2779_v15, %v831_v7  ;;  %v837_v10 = vcombine.high %v2779_v15, %v831_v7 }
 0x199   : > { %v844_v14 = vrot.slane %v836_v9, %v2789_v29  ;;  %v851_v16 = vrot.slane %v837_v10, %v2789_v29 }
 0x19a   : > { %v834_v11 = vpop.permute.xlu1 %833 }
 0x19b   : > { %v852_v12 = vcombine.low %v828_v8, %v834_v11  ;;  %v853_v13 = vcombine.high %v828_v8, %v834_v11 }
 0x19d   : > { %v860_v18 = vrot.slane %v852_v12, %v2789_v29  ;;  %v867_v19 = vrot.slane %v853_v13, %v2789_v29 }
 0x19e   : > { %v591_v52 = vpop.permute.xlu1 %590 }
 0x19f   : > { %v868_v20 = vcombine.low %v844_v14, %v860_v18  ;;  %v869_v21 = vcombine.high %v844_v14, %v860_v18  ;;  %v884_v22 = vcombine.low %v851_v16, %v867_v19  ;;  %v885_v23 = vcombine.high %v851_v16, %v867_v19 }
 0x1a1   : > { %v876_v24 = vrot.slane %v868_v20, %v2791_v35  ;;  %v883_v25 = vrot.slane %v869_v21, %v2791_v35  ;;  %v892_v15 = vrot.slane %v884_v22, %v2791_v35  ;;  %v899_v26 = vrot.slane %v885_v23, %v2791_v35 }
 0x1a2   : > { %v594_v53 = vpop.permute.xlu1 %593 }
 0x1a3   : > { %v904_v27 = vcombine.low %v876_v24, %v883_v25  ;;  %v1994_v28 = vcombine.high %v876_v24, %v883_v25  ;;  %v920_v30 = vcombine.low %v892_v15, %v899_v26  ;;  %v1995_v31 = vcombine.high %v892_v15, %v899_v26 }
 0x1a4   : > { %v599_v54 = vcombine.low %v2784_v17, %v594_v53  ;;  %v600_v55 = vcombine.high %v2784_v17, %v594_v53 }
 0x1a5   : > { %v911_v32 = vrot.slane %v904_v27, %v2789_v29  ;;  %v919_v33 = vrot.slane %v1994_v28, %v2789_v29  ;;  %v927_v34 = vrot.slane %v920_v30, %v2789_v29  ;;  %v935_v36 = vrot.slane %v1995_v31, %v2789_v29 }
 0x1a6   : > { %v597_v56 = vpop.permute.xlu1 %596  ;;  %v607_v57 = vrot.slane %v599_v54, %v2789_v29  ;;  %v614_v58 = vrot.slane %v600_v55, %v2789_v29 }
 0x1a7   : > { %v936_v37 = vcombine.low %v911_v32, %v919_v33  ;;  %v952_v38 = vcombine.low %v927_v34, %v935_v36  ;;  %v937_v41 = vcombine.high %v911_v32, %v919_v33  ;;  %v953_v42 = vcombine.high %v927_v34, %v935_v36 }
 0x1a8   : > { %v615_v59 = vcombine.low %v591_v52, %v597_v56  ;;  %v616_v60 = vcombine.high %v591_v52, %v597_v56 }
 0x1a9   : > { %v944_v39 = vrot.slane %v936_v37, %v2791_v35  ;;  %v960_v40 = vrot.slane %v952_v38, %v2791_v35  ;;  %v951_v46 = vrot.slane %v937_v41, %v2791_v35  ;;  %v967_v47 = vrot.slane %v953_v42, %v2791_v35 }
 0x1aa   : > { %v623_v61 = vrot.slane %v615_v59, %v2789_v29  ;;  %v630_v62 = vrot.slane %v616_v60, %v2789_v29 }
 0x1ab   : > { %v968_v43 = vcombine.low %v944_v39, %v960_v40  ;;  %v969_v45 = vcombine.high %v944_v39, %v960_v40  ;;  %v970_v49 = vcombine.low %v951_v46, %v967_v47  ;;  %v971_v51 = vcombine.high %v951_v46, %v967_v47 }
 0x1ac   : > { %v631_v63 = vcombine.low %v607_v57, %v623_v61  ;;  %v632_v0 = vcombine.high %v607_v57, %v623_v61  ;;  %v647_v1 = vcombine.low %v614_v58, %v630_v62  ;;  %v648_v2 = vcombine.high %v614_v58, %v630_v62 }
 0x1ad   : > { %2196 = vmatmul.mubr.msk.f32.vlgmr.msra.gmra.mrb[2].mxu1 %vm584_vm1, %v968_v43 }
 0x1ae   : > { %2199 = vmatpush3.xpose.msk.msra.mxu1 %vm584_vm1, %v973_v44  ;;  %2200 = vmatprep.mubr.msk.f32.mxu1 %vm2493_vm0, %v2494_v6  ;;  %v639_v4 = vrot.slane %v631_v63, %v2791_v35  ;;  %v646_v5 = vrot.slane %v632_v0, %v2791_v35  ;;  %v655_v17 = vrot.slane %v647_v1, %v2791_v35 }
 0x1af   : > { %2203 = vmatprep.subr.mxu1 %v2494_v6  ;;  %v662_v7 = vrot.slane %v648_v2, %v2791_v35 }
 0x1b0   : > { %v667_v8 = vcombine.low %v639_v4, %v646_v5  ;;  %v1992_v9 = vcombine.high %v639_v4, %v646_v5 }
 0x1b1   : > { %2201 = vmatmul.mubr.msk.f32.vlgmr.msra.gmra.mrb[4].mxu1 %vm584_vm1, %v969_v45  ;;  %v683_v10 = vcombine.low %v655_v17, %v662_v7  ;;  %v1993_v11 = vcombine.high %v655_v17, %v662_v7 }
 0x1b2   : > { %2204 = vmatpush3.xpose.msk.msra.mxu1 %vm584_vm1, %v974_v48  ;;  %2205 = vmatprep.mubr.msk.f32.mxu1 %vm2493_vm0, %v2494_v6  ;;  %v674_v12 = vrot.slane %v667_v8, %v2789_v29  ;;  %v682_v13 = vrot.slane %v1992_v9, %v2789_v29  ;;  %v1814_v8 = vld [vmem:[%s2983_s4] sm:$0xff]  ;;  %v1815_v9 = vld [vmem:[%s2983_s4 + $0x8] sm:$0xff] }
 0x1b3   : > { %2208 = vmatprep.subr.mxu1 %v2494_v6  ;;  %v690_v14 = vrot.slane %v683_v10, %v2789_v29  ;;  %v698_v16 = vrot.slane %v1993_v11, %v2789_v29  ;;  %v2317_v10 = vpack.c.bf16 %v1815_v9, %v1814_v8 }
 0x1b4   : > { %v699_v18 = vcombine.low %v674_v12, %v682_v13  ;;  %v700_v19 = vcombine.high %v674_v12, %v682_v13 }
 0x1b5   : > { %2206 = vmatmul.mubr.msk.f32.vlgmr.msra.gmra.mrb[6].mxu1 %vm584_vm1, %v970_v49  ;;  %v715_v20 = vcombine.low %v690_v14, %v698_v16  ;;  %v716_v21 = vcombine.high %v690_v14, %v698_v16  ;;  %2318 = vmatpush3.bf16.msra.mxu0 %v2317_v10 }
 0x1b6   : > { %2209 = vmatpush3.xpose.msk.msra.mxu1 %vm584_vm1, %v975_v50  ;;  %2210 = vmatprep.mubr.msk.f32.mxu1 %vm2493_vm0, %v2494_v6  ;;  %v707_v22 = vrot.slane %v699_v18, %v2791_v35  ;;  %v714_v23 = vrot.slane %v700_v19, %v2791_v35 }
 0x1b7   : > { %2213 = vmatprep.subr.mxu1 %v2494_v6  ;;  %v723_v24 = vrot.slane %v715_v20, %v2791_v35  ;;  %v730_v25 = vrot.slane %v716_v21, %v2791_v35  ;;  %2319 = vmatprep.subr.bf16.mxu0 %v2492_v3 }
 0x1b9   : > { %2211 = vmatmul.mubr.msk.f32.vlgmr.msra.gmra.mrb[8].mxu1 %vm584_vm1, %v971_v51  ;;  %v731_v15 = vcombine.low %v707_v22, %v723_v24  ;;  %v732_v26 = vcombine.high %v707_v22, %v723_v24  ;;  %v733_v27 = vcombine.low %v714_v23, %v730_v25  ;;  %v734_v28 = vcombine.high %v714_v23, %v730_v25 }
 0x1ba   : > { %2215 = vmatprep.mubr.msk.f32.mxu1 %vm2493_vm0, %v2494_v6 }
 0x1bb   : > { %735 = vst.msk [vmem:[#allocation3] sm:$0xff] %vm584_vm1, %v731_v15  ;;  %736 = vst.msk [vmem:[#allocation3 + $0x8] sm:$0xff] %vm584_vm1, %v732_v26 }
 0x1bc   : > { %737 = vst.msk [vmem:[#allocation3 + $0x10] sm:$0xff] %vm584_vm1, %v733_v27  ;;  %738 = vst.msk [vmem:[#allocation3 + $0x18] sm:$0xff] %vm584_vm1, %v734_v28 }
 0x1c2   : > { %v976_v30 = vld [vmem:[#allocation3] sm:$0xff]  ;;  %v977_v61 = vld [vmem:[#allocation3 + $0x8] sm:$0xff] }
 0x1c3   : > { %2214 = vmatpush3.msra.mxu1 %v976_v30  ;;  %v978_v0 = vld [vmem:[#allocation3 + $0x10] sm:$0xff]  ;;  %v979_v4 = vld [vmem:[#allocation3 + $0x18] sm:$0xff] }
 0x1c4   : > { %2218 = vmatprep.subr.mxu1 %v2494_v6 }
 0x280   : > { %v1053_v31 = vpop.f32.mrb[2].mxu1 }
 0x281   : > { %v2197_v32 = vpop.f32.mrb[3].mxu1  ;;  %v1285_v33 = vsel %vm584_vm1, %v1053_v31, -inf }
 0x282   : > { %1286 = vmax.xlane.f32.xlu0 %v1285_v33 }
 0x284   : > { %v1129_v34 = vpop.f32.mrb[4].mxu1 }
 0x285   : > { %v2202_v36 = vpop.f32.mrb[5].mxu1  ;;  %v1288_v37 = vsel %vm584_vm1, %v1129_v34, -inf }
 0x286   : > { %1289 = vmax.xlane.f32.xlu1 %v1288_v37 }
 0x288   : > { %v1205_v38 = vpop.f32.mrb[6].mxu1 }
 0x289   : > { %v2207_v39 = vpop.f32.mrb[7].mxu1  ;;  %v1291_v40 = vsel %vm584_vm1, %v1205_v38, -inf }
 0x28a   : > { %1292 = vmax.xlane.f32.xlu0 %v1291_v40 }
 0x28c   : > { %v1281_v41 = vpop.f32.mrb[8].mxu1 }
 0x28d   : > { %v2212_v42 = vpop.f32.mrb[9].mxu1  ;;  %v1294_v43 = vsel %vm584_vm1, %v1281_v41, -inf }
 0x28e   : > { %1295 = vmax.xlane.f32.xlu0 %v1294_v43 }
 0x30f   : > { %v1287_v44 = vpop.xlane.xlu0 %1286 }
 0x310   : > { %v1297_v45 = vmax.f32 %v1287_v44, -1e+30 }
 0x312   : > { %v1313_v46 = vsub.f32 %v1053_v31, %v1297_v45  ;;  %v1301_v11 = vsub.f32 -1e+30, %v1297_v45 }
 0x313   : > { %v1290_v47 = vpop.xlane.xlu1 %1289 }
 0x314   : > { %v1317_v48 = vmul.f32 1.442695, %v1313_v46  ;;  %v1298_v49 = vmax.f32 %v1290_v47, -1e+30 }
 0x316   : > { %v1314_v50 = vsub.f32 %v1129_v34, %v1298_v49  ;;  %2388 = vpow2.f32 %v1317_v48  ;;  %v1302_v12 = vsub.f32 -1e+30, %v1298_v49 }
 0x317   : > { %v1293_v51 = vpop.xlane.xlu0 %1292 }
 0x318   : > { %v1319_v52 = vmul.f32 1.442695, %v1314_v50  ;;  %v1299_v53 = vmax.f32 %v1293_v51, -1e+30  ;;  %v1307_v13 = vmul.f32 1.442695, %v1302_v12 }
 0x31a   : > { %v1315_v54 = vsub.f32 %v1205_v38, %v1299_v53  ;;  %2390 = vpow2.f32 %v1319_v52  ;;  %v1303_v14 = vsub.f32 -1e+30, %v1299_v53 }
 0x31b   : > { %v1296_v55 = vpop.xlane.xlu0 %1295 }
 0x31c   : > { %v1321_v56 = vmul.f32 1.442695, %v1315_v54  ;;  %v1300_v57 = vmax.f32 %v1296_v55, -1e+30  ;;  %v1309_v16 = vmul.f32 1.442695, %v1303_v14 }
 0x31e   : > { %v1316_v58 = vsub.f32 %v1281_v41, %v1300_v57  ;;  %2392 = vpow2.f32 %v1321_v56  ;;  %v1304_v18 = vsub.f32 -1e+30, %v1300_v57 }
 0x320   : > { %v1323_v59 = vmul.f32 1.442695, %v1316_v58  ;;  %v2389_v60 = vpop.eup %2388  ;;  %v1311_v19 = vmul.f32 1.442695, %v1304_v18  ;;  %v1816_v18 = vld [vmem:[%s2983_s4 + $0x10] sm:$0xff] }
 0x321   : > { %2216 = vmatmul.mubr.msk.f32.vlgmr.msra.gmra.mrb[10].mxu1 %vm584_vm1, %v2389_v60  ;;  %v1329_v62 = vsel %vm584_vm1, %v2389_v60, 0.0 }
 0x322   : > { %2394 = vpow2.f32 %v1323_v59  ;;  %2219 = vmatpush3.msra.mxu1 %v977_v61  ;;  %1330 = vadd.xlane.f32.xlu0 %v1329_v62 }
 0x323   : > { %2220 = vmatprep.mubr.msk.f32.mxu1 %vm2493_vm0, %v2494_v6  ;;  %2223 = vmatprep.subr.mxu1 %v2494_v6 }
 0x324   : > { %v2391_v63 = vpop.eup %2390 }
 0x325   : > { %2221 = vmatmul.mubr.msk.f32.vlgmr.msra.gmra.mrb[12].mxu1 %vm584_vm1, %v2391_v63  ;;  %v1332_v1 = vsel %vm584_vm1, %v2391_v63, 0.0 }
 0x326   : > { %2224 = vmatpush3.msra.mxu1 %v978_v0  ;;  %1333 = vadd.xlane.f32.xlu0 %v1332_v1 }
 0x327   : > { %2225 = vmatprep.mubr.msk.f32.mxu1 %vm2493_vm0, %v2494_v6  ;;  %2228 = vmatprep.subr.mxu1 %v2494_v6 }
 0x328   : > { %v2393_v2 = vpop.eup %2392 }
 0x329   : > { %2226 = vmatmul.mubr.msk.f32.vlgmr.msra.gmra.mrb[14].mxu1 %vm584_vm1, %v2393_v2  ;;  %v1335_v5 = vsel %vm584_vm1, %v2393_v2, 0.0 }
 0x32a   : > { %2229 = vmatpush3.msra.mxu1 %v979_v4  ;;  %1336 = vadd.xlane.f32.xlu0 %v1335_v5 }
 0x32b   : > { %2230 = vmatprep.mubr.msk.f32.mxu1 %vm2493_vm0, %v2494_v6  ;;  %v1305_v6 = vmul.f32 1.442695, %v1301_v11 }
 0x32c   : > { %v2395_v17 = vpop.eup %2394 }
 0x32d   : > { %2231 = vmatmul.mubr.msk.f32.vlgmr.msra.gmra.mrb[16].mxu1 %vm584_vm1, %v2395_v17  ;;  %v1338_v7 = vsel %vm584_vm1, %v2395_v17, 0.0  ;;  %2396 = vpow2.f32 %v1305_v6 }
 0x32e   : > { %1339 = vadd.xlane.f32.xlu1 %v1338_v7  ;;  %2398 = vpow2.f32 %v1307_v13 }
 0x32f   : > { %2400 = vpow2.f32 %v1309_v16 }
 0x330   : > { %2402 = vpow2.f32 %v1311_v19  ;;  %v1817_v19 = vld [vmem:[%s2983_s4 + $0x18] sm:$0xff] }
 0x337   : > { %v2397_v21 = vpop.eup %2396 }
 0x338   : > { %v1325_v22 = vmul.f32 0.0, %v2397_v21  ;;  %v2399_v23 = vpop.eup %2398 }
 0x339   : > { %v1326_v15 = vmul.f32 0.0, %v2399_v23  ;;  %v2401_v3 = vpop.eup %2400 }
 0x33a   : > { %v1327_v28 = vmul.f32 0.0, %v2401_v3  ;;  %v2403_v30 = vpop.eup %2402 }
 0x33b   : > { %v1328_v33 = vmul.f32 0.0, %v2403_v30 }
 0x3af   : > { %v1331_v20 = vpop.xlane.xlu0 %1330 }
 0x3b0   : > { %v1341_v25 = vadd.f32 %v1331_v20, %v1325_v22 }
 0x3b2   : > { %2404 = vrcp.f32 %v1341_v25 }
 0x3b3   : > { %v1334_v24 = vpop.xlane.xlu0 %1333 }
 0x3b4   : > { %v1342_v26 = vadd.f32 %v1334_v24, %v1326_v15  ;;  %v2320_v24 = vpack.c.bf16 %v1817_v19, %v1816_v18 }
 0x3b6   : > { %2406 = vrcp.f32 %v1342_v26  ;;  %2321 = vmatpush3.bf16.msra.mxu0 %v2320_v24 }
 0x3b7   : > { %v1337_v27 = vpop.xlane.xlu0 %1336 }
 0x3b8   : > { %v1343_v31 = vadd.f32 %v1337_v27, %v1327_v28 }
 0x3ba   : > { %2408 = vrcp.f32 %v1343_v31 }
 0x3bb   : > { %v1340_v32 = vpop.xlane.xlu1 %1339 }
 0x3bc   : > { %v1344_v34 = vadd.f32 %v1340_v32, %v1328_v33  ;;  %v2405_v36 = vpop.eup %2404 }
 0x3bd   : > { %v1645_v37 = vmul.f32 %v2405_v36, %v1341_v25 }
 0x3be   : > { %2410 = vrcp.f32 %v1344_v34 }
 0x3bf   : > { %v1649_v39 = vsub.f32 2.0, %v1645_v37 }
 0x3c0   : > { %v2407_v38 = vpop.eup %2406 }
 0x3c1   : > { %v1646_v40 = vmul.f32 %v2407_v38, %v1342_v26  ;;  %v1653_v46 = vmul.f32 %v2405_v36, %v1649_v39 }
 0x3c3   : > { %v1650_v43 = vsub.f32 2.0, %v1646_v40 }
 0x3c4   : > { %v2409_v41 = vpop.eup %2408 }
 0x3c5   : > { %v1647_v44 = vmul.f32 %v2409_v41, %v1343_v31  ;;  %v1654_v54 = vmul.f32 %v2407_v38, %v1650_v43 }
 0x3c7   : > { %v1651_v51 = vsub.f32 2.0, %v1647_v44 }
 0x3c8   : > { %v2411_v48 = vpop.eup %2410 }
 0x3c9   : > { %v1648_v52 = vmul.f32 %v2411_v48, %v1344_v34  ;;  %v1655_v60 = vmul.f32 %v2409_v41, %v1651_v51 }
 0x3cb   : > { %v1652_v58 = vsub.f32 2.0, %v1648_v52 }
 0x3cd   : > { %v1656_v4 = vmul.f32 %v2411_v48, %v1652_v58 }
 0x3f4   : > { %v1414_v42 = vpop.f32.mrb[10].mxu1 }
 0x3f5   : > { %v1637_v45 = vadd.f32 %v1414_v42, %v1325_v22  ;;  %v2217_v47 = vpop.f32.mrb[11].mxu1 }
 0x3f7   : > { %v1657_v49 = vmul.f32 %v1653_v46, %v1637_v45 }
 0x3f8   : > { %v1487_v50 = vpop.f32.mrb[12].mxu1 }
 0x3f9   : > { %v1638_v53 = vadd.f32 %v1487_v50, %v1326_v15  ;;  %v2222_v55 = vpop.f32.mrb[13].mxu1 }
 0x3fb   : > { %v1658_v56 = vmul.f32 %v1654_v54, %v1638_v53 }
 0x3fc   : > { %v1560_v57 = vpop.f32.mrb[14].mxu1 }
 0x3fd   : > { %v1639_v59 = vadd.f32 %v1560_v57, %v1327_v28  ;;  %v2227_v61 = vpop.f32.mrb[15].mxu1 }
 0x3ff   : > { %v1659_v62 = vmul.f32 %v1655_v60, %v1639_v59 }
 0x400   : > { %v1633_v63 = vpop.f32.mrb[16].mxu1 }
 0x401   : > { %v1661_v0 = vcombine.low %v1657_v49, %v1659_v62  ;;  %v1662_v1 = vcombine.high %v1657_v49, %v1659_v62  ;;  %v1640_v2 = vadd.f32 %v1633_v63, %v1328_v33  ;;  %v2232_v5 = vpop.f32.mrb[17].mxu1  ;;  %v2010_v49 = vld [vmem:[%s2984_s5] ss:$0 sm:$0xff] }
 0x403   : > { %v1660_v17 = vmul.f32 %v1656_v4, %v1640_v2  ;;  %v1669_v9 = vrot.slane %v1661_v0, %v2789_v29  ;;  %v1676_v10 = vrot.slane %v1662_v1, %v2789_v29 }
 0x405   : > { %v1677_v7 = vcombine.low %v1658_v56, %v1660_v17  ;;  %v1678_v8 = vcombine.high %v1658_v56, %v1660_v17 }
 0x407   : > { %v1685_v11 = vrot.slane %v1677_v7, %v2789_v29  ;;  %v1692_v6 = vrot.slane %v1678_v8, %v2789_v29 }
 0x409   : > { %v1693_v12 = vcombine.low %v1669_v9, %v1685_v11  ;;  %v1694_v13 = vcombine.high %v1669_v9, %v1685_v11  ;;  %v1709_v14 = vcombine.low %v1676_v10, %v1692_v6  ;;  %v1710_v16 = vcombine.high %v1676_v10, %v1692_v6 }
 0x40b   : > { %v1701_v20 = vrot.slane %v1693_v12, %v2791_v35  ;;  %v1708_v21 = vrot.slane %v1694_v13, %v2791_v35  ;;  %v1717_v22 = vrot.slane %v1709_v14, %v2791_v35  ;;  %v1724_v23 = vrot.slane %v1710_v16, %v2791_v35 }
 0x40d   : > { %v1729_v25 = vcombine.low %v1701_v20, %v1708_v21  ;;  %v2008_v15 = vcombine.high %v1701_v20, %v1708_v21  ;;  %v1745_v3 = vcombine.low %v1717_v22, %v1724_v23  ;;  %v2009_v26 = vcombine.high %v1717_v22, %v1724_v23 }
 0x40f   : > { %v1736_v27 = vrot.slane %v1729_v25, %v2789_v29  ;;  %v1744_v28 = vrot.slane %v2008_v15, %v2789_v29  ;;  %v1752_v30 = vrot.slane %v1745_v3, %v2789_v29  ;;  %v1760_v31 = vrot.slane %v2009_v26, %v2789_v29 }
 0x411   : > { %v1762_v32 = vcombine.high %v1736_v27, %v1744_v28  ;;  %v1778_v33 = vcombine.high %v1752_v30, %v1760_v31  ;;  %v1761_v34 = vcombine.low %v1736_v27, %v1744_v28  ;;  %v1777_v36 = vcombine.low %v1752_v30, %v1760_v31 }
 0x413   : > { %v1776_v37 = vrot.slane %v1762_v32, %v2791_v35  ;;  %v1792_v38 = vrot.slane %v1778_v33, %v2791_v35  ;;  %v1769_v39 = vrot.slane %v1761_v34, %v2791_v35  ;;  %v1785_v40 = vrot.slane %v1777_v36, %v2791_v35 }
 0x415   : > { %v1795_v41 = vcombine.low %v1776_v37, %v1792_v38  ;;  %v1794_v42 = vcombine.high %v1769_v39, %v1785_v40  ;;  %v1796_v43 = vcombine.high %v1776_v37, %v1792_v38  ;;  %v1793_v44 = vcombine.low %v1769_v39, %v1785_v40 }
 0x417   : > { %1802 = vrot.lane.b32.xlu1 %v1795_v41, %s2500_s11  ;;  %1798 = vrot.lane.b32.xlu0 %v1794_v42, %s2501_s12  ;;  %s2412_s11 = scalar_lea.vmem %s2934_s20, 128  ;;  %s2416_s12 = sshll.u32 %s2503_s24, 4  ;;  %s2417_s12 = int_to_ptr.vmem [resolvable:$false] %s2416_s12 }
 0x418   : > { %p2413_p12 = scmp.ne.s32.totalorder %s2934_s20, %s2412_s11  ;;  %p2419_p1 = scmp.lt.s32.totalorder %s2934_s20, %s2417_s12 }
 0x41a   : > { %p2414_p13 = pnand %p2413_p12, %p2579_p4 }
 0x41b   : > { %1806 = vrot.lane.b32.xlu1 %v1796_v43, %s2502_s14  ;;  %s2418_s14 = scalar_lea.vmem %s2417_s12, 256 }
 0x41c   : > { %p2415_p0 = pneg %p2414_p13  ;;  %p2420_p2 = scmp.lt.s32.totalorder %s2418_s14, %s2412_s11 }
 0x41e   : > { %p2421_p3 = por %p2420_p2, %p2419_p1 }
 0x420   : > { %p2422_p5 = pnand %p2421_p3, %p2415_p0 }
 0x489   : > { %v1803_v29 = vpop.permute.xlu1 %1802  ;;  %v1799_v45 = vpop.permute.xlu0 %1798 }
 0x48a   : > { %v1809_v46 = vsel %vm584_vm1, %v1793_v44, %v1799_v45 }
 0x48b   : > { %v1811_v47 = vsel %vm1810_vm2, %v1809_v46, %v1803_v29 }
 0x48d   : > { %v1807_v35 = vpop.permute.xlu1 %1806 }
 0x48e   : > { %v1813_v48 = vsel %vm1812_vm3, %v1811_v47, %v1807_v35 }
 0x48f   : > { %2242 = vmatmul.mubr.msk.f32.vlgmr.msra.gmra.mrb[4].mxu0 %vm1825_vm4, %v1813_v48 }
 0x562   : > { %v1895_v50 = vpop.f32.mrb[4].mxu0 }
 0x563   : > { %v1896_v51 = vadd.f32 %v2010_v49, %v1895_v50  ;;  %v2243_v52 = vpop.f32.mrb[5].mxu0 }
 0x565   : > { %1899 = vst [vmem:[%s256_s19] sm:$0xff] %v1896_v51 }
 0x566   : > { %2425 = shalt.err (!%p2422_p5)
}
 0x567   : > { %s2426_s15 = scalar_lea.hbm %s2932_s30, 128  ;;  %s2430_s17 = scalar_lea.hbm %s2985_s6, 256 }
 0x568   : > { %p2427_p6 = scmp.ne.s32.totalorder %s2932_s30, %s2426_s15  ;;  %p2431_p10 = scmp.lt.u32.totalorder %s2932_s30, %s2985_s6 }
 0x569   : > { %p2432_p11 = scmp.lt.u32.totalorder %s2430_s17, %s2426_s15  ;;  %p2434_p13 = scmp.lt.u32.totalorder %s2426_s15, %s2932_s30 }
 0x56a   : > { %p2428_p7 = pnand %p2427_p6, %p2579_p4 }
 0x56b   : > { %p2433_p12 = por %p2432_p11, %p2431_p10 }
 0x56c   : > { %p2429_p9 = pneg %p2428_p7 }
 0x56d   : > { %p2435_p0 = por %p2434_p13, %p2433_p12 }
 0x56f   : > { %p2436_p1 = pnand %p2435_p0, %p2429_p9 }
 0x571   : > { %2439 = shalt.err (!%p2436_p1)
}
 0x572   : > { %2322 = dma.vmem_to_hbm [thread:$0]  (%p2579_p4), %s2934_s20, 128, %s2932_s30, %s1901_s8  }
 0x573 PF: > { %p2328_p2 = scmp.ge.s32.totalorder %s2490_s26, 2  ;;  %s1927_s27 = sand.u32 1, %s2470_s21  }
 0x574   : > { %s1928_s28 = scalar_lea.sflag [#allocation5], %s1927_s27 }
 0x575   : > { %p2325_p3 = pnand %p2328_p2, %p2586_p8 }
 0x577   : > { %2465 = dma.done.wait (!%p2325_p3), %s1928_s28, 128  }
 0x578   : > { %2467 = vsyncadd (!%p2325_p3), %s1928_s28, 4294967168  ;;  %s19_s26 = sadd.s32 1, %s2490_s26   ;;  %s2988_s21 = smov %s2474_s22 }
 0x579   : > { %p16_p5 = scmp.ge.s32.totalorder %s19_s26, 4   ;;  %s2989_s22 = smov %s2478_s23 }
 0x57a   : > { %s2990_s23 = smov %s2592_s10  ;;  %s2991_s24 = smov %s2486_s25 }
 0x57b   : > { %s2992_s25 = smov %s2994_s29  ;;  %18 = sbr.rel (!%p16_p5) target bundleno = 4 (0x4), region = 83 }
 0x582   :  { %1933 = vsyncpa [#allocation5], 1 }
 0x583   :  { %1935 = vsyncpa [#allocation5 + $0x1], 1 }

</bundles_post_ra>
